<compile_context>
chip_gen: v6e
topology: v6e:2x2x1
jax: 0.10.0
libtpu: 0.0.40
codegen_flags: <defaults>
</compile_context>

<pallas_src>
import functools
import math

import jax
import jax.numpy as jnp
from jax.experimental import pallas as pl
from jax.experimental.pallas import tpu as pltpu

MASK_MIN = float(jnp.finfo(jnp.float32).min)  # torch.finfo(float32).min
LN_EPS = 1e-12                                # torch.nn.LayerNorm default in HF


# ----------------------------- in-kernel helpers --------------------------- #

def _erf(x):
    # Abramowitz & Stegun 7.1.26 polynomial erf, |abs err| <= 1.5e-7.
    # Built only from exp / mul / add / where, which lower on v5e/v6e/v7x.
    # TODO(synk): switch to jax.lax.erf if Mosaic exposes a direct erf lowering.
    a1, a2, a3, a4, a5 = (0.254829592, -0.284496736, 1.421413741,
                          -1.453152027, 1.061405429)
    p = 0.3275911
    ax = jnp.abs(x)
    t = pl.reciprocal(1.0 + p * ax, approx=True)          # EUP slot
    poly = ((((a5 * t + a4) * t + a3) * t + a2) * t + a1) * t
    y = 1.0 - poly * jnp.exp(-ax * ax)
    return jnp.where(x >= 0.0, y, -y)


def _gelu_exact(x):
    return 0.5 * x * (1.0 + _erf(x * (1.0 / math.sqrt(2.0))))


def _layer_norm(y, g, b, eps):
    mean = jnp.mean(y, axis=-1, keepdims=True)
    var = jnp.mean(jnp.square(y - mean), axis=-1, keepdims=True)
    return (y - mean) * jax.lax.rsqrt(var + eps) * g + b


# ------------------------------ fused kernel ------------------------------- #

def _encoder_kernel(x_emb_ref, bias_ref, eg_ref, eb_ref,
                    wqkv_ref, bqkv_ref, wo_ref, bo_ref, sag_ref, sab_ref,
                    w1_ref, b1_ref, w2_ref, b2_ref, og_ref, ob_ref,
                    o_ref, *, n_heads, eps):
    """One grid step == one transformer layer. Hidden state is carried in
    o_ref (same output block index across the layer axis => VMEM-resident)."""
    l = pl.program_id(0)

    # Layer 0: embedding add was done in XLA glue; LayerNorm it here.
    @pl.when(l == 0)
    def _():
        o_ref[...] = _layer_norm(x_emb_ref[...], eg_ref[...], eb_ref[...], eps)

    x = o_ref[...]                                   # (BS, H) f32, from layer l-1
    H = x.shape[-1]
    d = H // n_heads

    # ---- attention block: fused QKV -> per-head SDPA -> out proj -> +res -> LN
    qkv = (jnp.dot(x.astype(jnp.bfloat16), wqkv_ref[0],
                   preferred_element_type=jnp.float32)
           + bqkv_ref[0])                            # (BS, 3H) f32; q pre-scaled
    qkv_bf = qkv.astype(jnp.bfloat16)
    bias = bias_ref[...]                             # (BS, BS) additive mask
    wo = wo_ref[0]                                   # (H, H) bf16

    sa = bo_ref[0]                                   # (1, H), broadcasts
    for hd in range(n_heads):                        # static unroll over heads
        q = qkv_bf[:, hd * d:(hd + 1) * d]
        k = qkv_bf[:, H + hd * d:H + (hd + 1) * d]
        v = qkv_bf[:, 2 * H + hd * d:2 * H + (hd + 1) * d]
        s = jax.lax.dot_general(                     # q @ k^T  -> (BS, BS)
            q, k, (((1,), (1,)), ((), ())),
            preferred_element_type=jnp.float32)
        s = s + bias                                 # padding + cross-batch mask
        s = s - jnp.max(s, axis=-1, keepdims=True)
        p = jnp.exp(s)
        p = p * pl.reciprocal(jnp.sum(p, axis=-1, keepdims=True), approx=True)
        ctx = jnp.dot(p.astype(jnp.bfloat16), v,
                      preferred_element_type=jnp.float32)        # (BS, d)
        # concat(ctx_h) @ Wo == sum_h ctx_h @ Wo[h*d:(h+1)*d, :] -> no concat
        sa = sa + jnp.dot(ctx.astype(jnp.bfloat16), wo[hd * d:(hd + 1) * d, :],
                          preferred_element_type=jnp.float32)    # (BS, H)

    h1 = _layer_norm(x + sa, sag_ref[0], sab_ref[0], eps)

    # ---- FFN block: W1 -> exact(erf) GELU -> W2 -> +res -> LN
    ff = (jnp.dot(h1.astype(jnp.bfloat16), w1_ref[0],
                  preferred_element_type=jnp.float32)
          + b1_ref[0])                               # (BS, F)
    ff = _gelu_exact(ff)
    ff = (jnp.dot(ff.astype(jnp.bfloat16), w2_ref[0],
                  preferred_element_type=jnp.float32)
          + b2_ref[0])                               # (BS, H)

    o_ref[...] = _layer_norm(h1 + ff, og_ref[0], ob_ref[0], eps)


# ------------------------------ host wrapper ------------------------------- #

def distilbert_encoder(x_emb, attn_bias, p, cfg):
    BS, H = x_emb.shape
    F = cfg.hidden_dim
    L = cfg.n_layers

    def const2(shape):
        return pl.BlockSpec(shape, lambda l: (0, 0))

    def per_layer(shape):                            # leading layer axis
        return pl.BlockSpec((1,) + shape[1:], lambda l: (l, 0, 0))

    grid_spec = pltpu.PrefetchScalarGridSpec(
        num_scalar_prefetch=0,
        grid=(L,),
        in_specs=[
            const2((BS, H)),                 # x_emb (word+pos, pre-LN)
            const2((BS, BS)),                # additive attention bias
            const2((1, H)),                  # emb LN gamma
            const2((1, H)),                  # emb LN beta
            per_layer(p["wqkv"].shape),      # (L, H, 3H)
            per_layer(p["bqkv"].shape),      # (L, 1, 3H)
            per_layer(p["wo"].shape),        # (L, H, H)
            per_layer(p["bo"].shape),        # (L, 1, H)
            per_layer(p["sa_ln_g"].shape),
            per_layer(p["sa_ln_b"].shape),
            per_layer(p["w1"].shape),        # (L, H, F)
            per_layer(p["b1"].shape),        # (L, 1, F)
            per_layer(p["w2"].shape),        # (L, F, H)
            per_layer(p["b2"].shape),        # (L, 1, H)
            per_layer(p["out_ln_g"].shape),
            per_layer(p["out_ln_b"].shape),
        ],
        out_specs=pl.BlockSpec((BS, H), lambda l: (0, 0)),   # VMEM-resident carry
    )
    return pl.pallas_call(
        functools.partial(_encoder_kernel, n_heads=cfg.n_heads, eps=LN_EPS),
        out_shape=jax.ShapeDtypeStruct((BS, H), jnp.float32),
        grid_spec=grid_spec,
        compiler_params=pltpu.CompilerParams(
            dimension_semantics=("arbitrary",)),     # sequential over layers
    )(x_emb, attn_bias, p["emb_ln_g"], p["emb_ln_b"],
      p["wqkv"], p["bqkv"], p["wo"], p["bo"], p["sa_ln_g"], p["sa_ln_b"],
      p["w1"], p["b1"], p["w2"], p["b2"], p["out_ln_g"], p["out_ln_b"])


# --------------------------- DistilBERT (synthetic) ------------------------ #

class Config:
    vocab_size = 100
    max_position_embeddings = 16
    dim = 128          # multiple of 128 -> lane-dense activations/stores
    n_heads = 2        # head_dim = 64 (same as real DistilBERT)
    n_layers = 2
    hidden_dim = 512   # 4 * dim, multiple of 128


def init_params(key, cfg):
    def normal(k, shape):
        return 0.02 * jax.random.normal(k, shape, dtype=jnp.float32)

    H, F, L = cfg.dim, cfg.hidden_dim, cfg.n_layers
    d = H // cfg.n_heads
    scale = 1.0 / math.sqrt(d)
    keys = iter(jax.random.split(key, 2 + L * 6))

    params = {
        "word_emb": normal(next(keys), (cfg.vocab_size, H)),
        "pos_emb": normal(next(keys), (cfg.max_position_embeddings, H)),
        "emb_ln_g": jnp.ones((1, H), jnp.float32),
        "emb_ln_b": jnp.zeros((1, H), jnp.float32),
    }

    wqkv, wo, w1, w2 = [], [], [], []
    for _ in range(L):
        wq = normal(next(keys), (H, H))
        wk = normal(next(keys), (H, H))
        wv = normal(next(keys), (H, H))
        wo.append(normal(next(keys), (H, H)))
        w1.append(normal(next(keys), (H, F)))
        w2.append(normal(next(keys), (F, H)))
        # Fuse Q/K/V projections into one [H, 3H] weight; fold 1/sqrt(head_dim)
        # into the query projection (one-time host op).
        wqkv.append(jnp.concatenate([wq * scale, wk, wv], axis=1))

    params.update({
        "wqkv": jnp.stack(wqkv).astype(jnp.bfloat16),     # (L, H, 3H)
        "bqkv": jnp.zeros((L, 1, 3 * H), jnp.float32),
        "wo": jnp.stack(wo).astype(jnp.bfloat16),         # (L, H, H)
        "bo": jnp.zeros((L, 1, H), jnp.float32),
        "sa_ln_g": jnp.ones((L, 1, H), jnp.float32),
        "sa_ln_b": jnp.zeros((L, 1, H), jnp.float32),
        "w1": jnp.stack(w1).astype(jnp.bfloat16),         # (L, H, F)
        "b1": jnp.zeros((L, 1, F), jnp.float32),
        "w2": jnp.stack(w2).astype(jnp.bfloat16),         # (L, F, H)
        "b2": jnp.zeros((L, 1, H), jnp.float32),
        "out_ln_g": jnp.ones((L, 1, H), jnp.float32),
        "out_ln_b": jnp.zeros((L, 1, H), jnp.float32),
    })
    return params


def distilbert_wrapper_forward(params, cfg, input_ids, attention_mask,
                               token_type_ids, position_ids):
    """_DistilBertWrapper.forward: token_type_ids / position_ids are ignored;
    the wrapped DistilBERT is called with (input_ids, attention_mask) only."""
    del token_type_ids, position_ids   # explicitly dropped by the wrapper

    B, S = input_ids.shape
    H = cfg.dim

    # Embedding gather stays in XLA glue (no clean tiled-Pallas equivalent at
    # this scale); add + LayerNorm + both transformer layers are fused in one
    # Pallas kernel. Batch is flattened into the matmul M dimension.
    pos = jnp.arange(S, dtype=jnp.int32)
    we = jnp.take(params["word_emb"], input_ids, axis=0)       # (B, S, H)
    pe = params["pos_emb"][pos]                                # (S, H)
    x_emb = (we + pe[None, :, :]).reshape(B * S, H)

    # Additive attention bias: 0 where query may attend key (same batch AND
    # key not padded), MASK_MIN otherwise (masked_fill semantics after softmax).
    same_b = jnp.arange(B)[:, None] == jnp.arange(B)[None, :]       # (Bq, Bk)
    keep_k = attention_mask > 0                                     # (Bk, Sk)
    allowed = same_b[:, :, None] & keep_k[None, :, :]               # (Bq, Bk, Sk)
    allowed = jnp.broadcast_to(allowed[:, None, :, :], (B, S, B, S))
    attn_bias = jnp.where(allowed, 0.0, MASK_MIN).astype(jnp.float32)
    attn_bias = attn_bias.reshape(B * S, B * S)

    h = distilbert_encoder(x_emb, attn_bias, params, cfg)           # (B*S, H)
    return h.reshape(B, S, H)  # last_hidden_state


# --------------------------------- main ------------------------------------ #

if __name__ == "__main__":
    cfg = Config()
    key = jax.random.PRNGKey(0)
    k_param, k_ids = jax.random.split(key)

    B, S = 2, 16
    params = init_params(k_param, cfg)

    input_ids = jax.random.randint(k_ids, (B, S), 0, cfg.vocab_size,
                                   dtype=jnp.int32)
    attention_mask = jnp.concatenate(
        [jnp.ones((1, S), jnp.int32),
         jnp.concatenate([jnp.ones((1, S - 6), jnp.int32),
                          jnp.zeros((1, 6), jnp.int32)], axis=1)], axis=0)
    token_type_ids = jnp.zeros((B, S), dtype=jnp.int32)   # ignored by wrapper
    position_ids = jnp.tile(jnp.arange(S, dtype=jnp.int32)[None], (B, 1))  # ignored

    run = jax.jit(lambda p, ids, am, tt, pid:
                  distilbert_wrapper_forward(p, cfg, ids, am, tt, pid))
    out = run(params, input_ids, attention_mask, token_type_ids, position_ids)
    out = jax.block_until_ready(out)

    assert out.shape == (B, S, cfg.dim) and out.dtype == jnp.float32
    assert bool(jnp.all(jnp.isfinite(out)))
    print("KERNEL_OK")
</pallas_src>

<mosaic_0001>
module attributes {stable_mosaic.version = 11 : i64} {
  func.func @_encoder_kernel(%arg0: i32, %arg1: memref<32x128xf32, #tpu.memory_space<vmem>>, %arg2: memref<32x32xf32, #tpu.memory_space<vmem>>, %arg3: memref<1x128xf32, #tpu.memory_space<vmem>>, %arg4: memref<1x128xf32, #tpu.memory_space<vmem>>, %arg5: memref<1x128x384xbf16, #tpu.memory_space<vmem>>, %arg6: memref<1x1x384xf32, #tpu.memory_space<vmem>>, %arg7: memref<1x128x128xbf16, #tpu.memory_space<vmem>>, %arg8: memref<1x1x128xf32, #tpu.memory_space<vmem>>, %arg9: memref<1x1x128xf32, #tpu.memory_space<vmem>>, %arg10: memref<1x1x128xf32, #tpu.memory_space<vmem>>, %arg11: memref<1x128x512xbf16, #tpu.memory_space<vmem>>, %arg12: memref<1x1x512xf32, #tpu.memory_space<vmem>>, %arg13: memref<1x512x128xbf16, #tpu.memory_space<vmem>>, %arg14: memref<1x1x128xf32, #tpu.memory_space<vmem>>, %arg15: memref<1x1x128xf32, #tpu.memory_space<vmem>>, %arg16: memref<1x1x128xf32, #tpu.memory_space<vmem>>, %arg17: memref<32x128xf32, #tpu.memory_space<vmem>>) attributes {dimension_semantics = [#tpu.dimension_semantics<arbitrary>], iteration_bounds = array<i64: 2>, scalar_prefetch = 0 : i64, scratch_operands = 0 : i64, tpu.core_type = #tpu.core_type<tc>, window_params = [{pipeline_mode = #tpu.pipeline_mode<synchronous>, transform_indices = @transform_0, window_bounds = array<i64: 32, 128>}, {pipeline_mode = #tpu.pipeline_mode<synchronous>, transform_indices = @transform_1, window_bounds = array<i64: 32, 32>}, {pipeline_mode = #tpu.pipeline_mode<synchronous>, transform_indices = @transform_2, window_bounds = array<i64: 1, 128>}, {pipeline_mode = #tpu.pipeline_mode<synchronous>, transform_indices = @transform_3, window_bounds = array<i64: 1, 128>}, {transform_indices = @transform_4, window_bounds = array<i64: 1, 128, 384>}, {transform_indices = @transform_5, window_bounds = array<i64: 1, 1, 384>}, {transform_indices = @transform_6, window_bounds = array<i64: 1, 128, 128>}, {transform_indices = @transform_7, window_bounds = array<i64: 1, 1, 128>}, {transform_indices = @transform_8, window_bounds = array<i64: 1, 1, 128>}, {transform_indices = @transform_9, window_bounds = array<i64: 1, 1, 128>}, {transform_indices = @transform_10, window_bounds = array<i64: 1, 128, 512>}, {transform_indices = @transform_11, window_bounds = array<i64: 1, 1, 512>}, {transform_indices = @transform_12, window_bounds = array<i64: 1, 512, 128>}, {transform_indices = @transform_13, window_bounds = array<i64: 1, 1, 128>}, {transform_indices = @transform_14, window_bounds = array<i64: 1, 1, 128>}, {transform_indices = @transform_15, window_bounds = array<i64: 1, 1, 128>}, {pipeline_mode = #tpu.pipeline_mode<synchronous>, transform_indices = @transform_16, window_bounds = array<i64: 32, 128>}]} {
    %c0_i32 = arith.constant 0 : i32
    %0 = arith.cmpi eq, %arg0, %c0_i32 : i32
    %1 = arith.extui %0 : i1 to i32
    %c0_i32_0 = arith.constant 0 : i32
    %2 = arith.cmpi ne, %1, %c0_i32_0 : i32
    scf.if %2 {
      %c0_78 = arith.constant 0 : index
      %c0_79 = arith.constant 0 : index
      %171 = vector.load %arg1[%c0_78, %c0_79] : memref<32x128xf32, #tpu.memory_space<vmem>>, vector<32x128xf32>
      %c0_80 = arith.constant 0 : index
      %c0_81 = arith.constant 0 : index
      %172 = vector.load %arg3[%c0_80, %c0_81] : memref<1x128xf32, #tpu.memory_space<vmem>>, vector<1x128xf32>
      %c0_82 = arith.constant 0 : index
      %c0_83 = arith.constant 0 : index
      %173 = vector.load %arg4[%c0_82, %c0_83] : memref<1x128xf32, #tpu.memory_space<vmem>>, vector<1x128xf32>
      %cst_84 = arith.constant dense<0.000000e+00> : vector<32xf32>
      %174 = vector.multi_reduction <add>, %171, %cst_84 [1] : vector<32x128xf32> to vector<32xf32>
      %175 = vector.shape_cast %174 : vector<32xf32> to vector<32x1xf32>
      %cst_85 = arith.constant 1.280000e+02 : f32
      %176 = vector.broadcast %cst_85 : f32 to vector<32x1xf32>
      %177 = arith.divf %175, %176 : vector<32x1xf32>
      %178 = vector.broadcast %177 : vector<32x1xf32> to vector<32x128xf32>
      %179 = arith.subf %171, %178 : vector<32x128xf32>
      %180 = arith.mulf %179, %179 : vector<32x128xf32>
      %cst_86 = arith.constant dense<0.000000e+00> : vector<32xf32>
      %181 = vector.multi_reduction <add>, %180, %cst_86 [1] : vector<32x128xf32> to vector<32xf32>
      %182 = vector.shape_cast %181 : vector<32xf32> to vector<32x1xf32>
      %cst_87 = arith.constant 1.280000e+02 : f32
      %183 = vector.broadcast %cst_87 : f32 to vector<32x1xf32>
      %184 = arith.divf %182, %183 : vector<32x1xf32>
      %185 = vector.broadcast %177 : vector<32x1xf32> to vector<32x128xf32>
      %186 = arith.subf %171, %185 : vector<32x128xf32>
      %cst_88 = arith.constant 9.99999996E-13 : f32
      %187 = vector.broadcast %cst_88 : f32 to vector<32x1xf32>
      %188 = arith.addf %184, %187 : vector<32x1xf32>
      %189 = math.rsqrt %188 : vector<32x1xf32>
      %190 = vector.broadcast %189 : vector<32x1xf32> to vector<32x128xf32>
      %191 = arith.mulf %186, %190 : vector<32x128xf32>
      %192 = vector.broadcast %172 : vector<1x128xf32> to vector<32x128xf32>
      %193 = arith.mulf %191, %192 : vector<32x128xf32>
      %194 = vector.broadcast %173 : vector<1x128xf32> to vector<32x128xf32>
      %195 = arith.addf %193, %194 : vector<32x128xf32>
      %c0_89 = arith.constant 0 : index
      %c0_90 = arith.constant 0 : index
      %196 = vector.load %arg17[%c0_89, %c0_90] : memref<32x128xf32, #tpu.memory_space<vmem>>, vector<32x128xf32>
      tpu.vector_store %arg17[%c0_89, %c0_90], %195 {strides = array<i32>} : memref<32x128xf32, #tpu.memory_space<vmem>>, vector<32x128xf32>,
    } else {
    }
    %c0 = arith.constant 0 : index
    %c0_1 = arith.constant 0 : index
    %3 = vector.load %arg17[%c0, %c0_1] : memref<32x128xf32, #tpu.memory_space<vmem>>, vector<32x128xf32>
    %4 = arith.truncf %3 : vector<32x128xf32> to vector<32x128xbf16>
    %c0_2 = arith.constant 0 : index
    %c0_3 = arith.constant 0 : index
    %c0_4 = arith.constant 0 : index
    %5 = vector.load %arg5[%c0_2, %c0_3, %c0_4] : memref<1x128x384xbf16, #tpu.memory_space<vmem>>, vector<1x128x384xbf16>
    %6 = vector.shape_cast %5 : vector<1x128x384xbf16> to vector<128x384xbf16>
    %cst = arith.constant dense<0.000000e+00> : vector<32x384xf32>
    %7 = tpu.matmul %4, %6, %cst {dimension_numbers = #tpu.dot_dimension_numbers<[1], [0], [0], [1], [0, 0, 1, 1], [], []>} : vector<32x128xbf16>, vector<128x384xbf16>, vector<32x384xf32> -> vector<32x384xf32>
    %c0_5 = arith.constant 0 : index
    %c0_6 = arith.constant 0 : index
    %c0_7 = arith.constant 0 : index
    %8 = vector.load %arg6[%c0_5, %c0_6, %c0_7] : memref<1x1x384xf32, #tpu.memory_space<vmem>>, vector<1x1x384xf32>
    %9 = vector.shape_cast %8 : vector<1x1x384xf32> to vector<1x384xf32>
    %10 = vector.broadcast %9 : vector<1x384xf32> to vector<32x384xf32>
    %11 = arith.addf %7, %10 : vector<32x384xf32>
    %12 = arith.truncf %11 : vector<32x384xf32> to vector<32x384xbf16>
    %c0_8 = arith.constant 0 : index
    %c0_9 = arith.constant 0 : index
    %13 = vector.load %arg2[%c0_8, %c0_9] : memref<32x32xf32, #tpu.memory_space<vmem>>, vector<32x32xf32>
    %c0_10 = arith.constant 0 : index
    %c0_11 = arith.constant 0 : index
    %c0_12 = arith.constant 0 : index
    %14 = vector.load %arg7[%c0_10, %c0_11, %c0_12] : memref<1x128x128xbf16, #tpu.memory_space<vmem>>, vector<1x128x128xbf16>
    %15 = vector.shape_cast %14 : vector<1x128x128xbf16> to vector<128x128xbf16>
    %c0_13 = arith.constant 0 : index
    %c0_14 = arith.constant 0 : index
    %c0_15 = arith.constant 0 : index
    %16 = vector.load %arg8[%c0_13, %c0_14, %c0_15] : memref<1x1x128xf32, #tpu.memory_space<vmem>>, vector<1x1x128xf32>
    %17 = vector.shape_cast %16 : vector<1x1x128xf32> to vector<1x128xf32>
    %18 = vector.extract_strided_slice %12 {offsets = [0, 0], sizes = [32, 64], strides = [1, 1]} : vector<32x384xbf16> to vector<32x64xbf16>
    %19 = vector.extract_strided_slice %12 {offsets = [0, 128], sizes = [32, 64], strides = [1, 1]} : vector<32x384xbf16> to vector<32x64xbf16>
    %20 = vector.extract_strided_slice %12 {offsets = [0, 256], sizes = [32, 64], strides = [1, 1]} : vector<32x384xbf16> to vector<32x64xbf16>
    %cst_16 = arith.constant dense<0.000000e+00> : vector<32x32xf32>
    %21 = tpu.matmul %18, %19, %cst_16 {dimension_numbers = #tpu.dot_dimension_numbers<[1], [1], [0], [0], [0, 0, 1, 0], [], []>} : vector<32x64xbf16>, vector<32x64xbf16>, vector<32x32xf32> -> vector<32x32xf32>
    %22 = arith.addf %21, %13 : vector<32x32xf32>
    %cst_17 = arith.constant dense<0xFF800000> : vector<32xf32>
    %23 = vector.multi_reduction <maximumf>, %22, %cst_17 [1] : vector<32x32xf32> to vector<32xf32>
    %24 = vector.shape_cast %23 : vector<32xf32> to vector<32x1xf32>
    %25 = vector.broadcast %24 : vector<32x1xf32> to vector<32x32xf32>
    %26 = arith.subf %22, %25 : vector<32x32xf32>
    %27 = math.exp %26 : vector<32x32xf32>
    %cst_18 = arith.constant dense<0.000000e+00> : vector<32xf32>
    %28 = vector.multi_reduction <add>, %27, %cst_18 [1] : vector<32x32xf32> to vector<32xf32>
    %29 = vector.shape_cast %28 : vector<32xf32> to vector<32x1xf32>
    %30 = tpu.reciprocal %29 {approx = true} : vector<32x1xf32> -> vector<32x1xf32>
    %31 = vector.broadcast %30 : vector<32x1xf32> to vector<32x32xf32>
    %32 = arith.mulf %27, %31 : vector<32x32xf32>
    %33 = arith.truncf %32 : vector<32x32xf32> to vector<32x32xbf16>
    %cst_19 = arith.constant dense<0.000000e+00> : vector<32x64xf32>
    %34 = tpu.matmul %33, %20, %cst_19 {dimension_numbers = #tpu.dot_dimension_numbers<[1], [0], [0], [1], [0, 0, 1, 1], [], []>} : vector<32x32xbf16>, vector<32x64xbf16>, vector<32x64xf32> -> vector<32x64xf32>
    %35 = arith.truncf %34 : vector<32x64xf32> to vector<32x64xbf16>
    %36 = vector.extract_strided_slice %15 {offsets = [0, 0], sizes = [64, 128], strides = [1, 1]} : vector<128x128xbf16> to vector<64x128xbf16>
    %cst_20 = arith.constant dense<0.000000e+00> : vector<32x128xf32>
    %37 = tpu.matmul %35, %36, %cst_20 {dimension_numbers = #tpu.dot_dimension_numbers<[1], [0], [0], [1], [0, 0, 1, 1], [], []>} : vector<32x64xbf16>, vector<64x128xbf16>, vector<32x128xf32> -> vector<32x128xf32>
    %38 = vector.broadcast %17 : vector<1x128xf32> to vector<32x128xf32>
    %39 = arith.addf %38, %37 : vector<32x128xf32>
    %40 = vector.extract_strided_slice %12 {offsets = [0, 64], sizes = [32, 64], strides = [1, 1]} : vector<32x384xbf16> to vector<32x64xbf16>
    %41 = vector.extract_strided_slice %12 {offsets = [0, 192], sizes = [32, 64], strides = [1, 1]} : vector<32x384xbf16> to vector<32x64xbf16>
    %42 = vector.extract_strided_slice %12 {offsets = [0, 320], sizes = [32, 64], strides = [1, 1]} : vector<32x384xbf16> to vector<32x64xbf16>
    %cst_21 = arith.constant dense<0.000000e+00> : vector<32x32xf32>
    %43 = tpu.matmul %40, %41, %cst_21 {dimension_numbers = #tpu.dot_dimension_numbers<[1], [1], [0], [0], [0, 0, 1, 0], [], []>} : vector<32x64xbf16>, vector<32x64xbf16>, vector<32x32xf32> -> vector<32x32xf32>
    %44 = arith.addf %43, %13 : vector<32x32xf32>
    %cst_22 = arith.constant dense<0xFF800000> : vector<32xf32>
    %45 = vector.multi_reduction <maximumf>, %44, %cst_22 [1] : vector<32x32xf32> to vector<32xf32>
    %46 = vector.shape_cast %45 : vector<32xf32> to vector<32x1xf32>
    %47 = vector.broadcast %46 : vector<32x1xf32> to vector<32x32xf32>
    %48 = arith.subf %44, %47 : vector<32x32xf32>
    %49 = math.exp %48 : vector<32x32xf32>
    %cst_23 = arith.constant dense<0.000000e+00> : vector<32xf32>
    %50 = vector.multi_reduction <add>, %49, %cst_23 [1] : vector<32x32xf32> to vector<32xf32>
    %51 = vector.shape_cast %50 : vector<32xf32> to vector<32x1xf32>
    %52 = tpu.reciprocal %51 {approx = true} : vector<32x1xf32> -> vector<32x1xf32>
    %53 = vector.broadcast %52 : vector<32x1xf32> to vector<32x32xf32>
    %54 = arith.mulf %49, %53 : vector<32x32xf32>
    %55 = arith.truncf %54 : vector<32x32xf32> to vector<32x32xbf16>
    %cst_24 = arith.constant dense<0.000000e+00> : vector<32x64xf32>
    %56 = tpu.matmul %55, %42, %cst_24 {dimension_numbers = #tpu.dot_dimension_numbers<[1], [0], [0], [1], [0, 0, 1, 1], [], []>} : vector<32x32xbf16>, vector<32x64xbf16>, vector<32x64xf32> -> vector<32x64xf32>
    %57 = arith.truncf %56 : vector<32x64xf32> to vector<32x64xbf16>
    %58 = vector.extract_strided_slice %15 {offsets = [64, 0], sizes = [64, 128], strides = [1, 1]} : vector<128x128xbf16> to vector<64x128xbf16>
    %cst_25 = arith.constant dense<0.000000e+00> : vector<32x128xf32>
    %59 = tpu.matmul %57, %58, %cst_25 {dimension_numbers = #tpu.dot_dimension_numbers<[1], [0], [0], [1], [0, 0, 1, 1], [], []>} : vector<32x64xbf16>, vector<64x128xbf16>, vector<32x128xf32> -> vector<32x128xf32>
    %60 = arith.addf %39, %59 : vector<32x128xf32>
    %61 = arith.addf %3, %60 : vector<32x128xf32>
    %c0_26 = arith.constant 0 : index
    %c0_27 = arith.constant 0 : index
    %c0_28 = arith.constant 0 : index
    %62 = vector.load %arg9[%c0_26, %c0_27, %c0_28] : memref<1x1x128xf32, #tpu.memory_space<vmem>>, vector<1x1x128xf32>
    %63 = vector.shape_cast %62 : vector<1x1x128xf32> to vector<1x128xf32>
    %c0_29 = arith.constant 0 : index
    %c0_30 = arith.constant 0 : index
    %c0_31 = arith.constant 0 : index
    %64 = vector.load %arg10[%c0_29, %c0_30, %c0_31] : memref<1x1x128xf32, #tpu.memory_space<vmem>>, vector<1x1x128xf32>
    %65 = vector.shape_cast %64 : vector<1x1x128xf32> to vector<1x128xf32>
    %cst_32 = arith.constant dense<0.000000e+00> : vector<32xf32>
    %66 = vector.multi_reduction <add>, %61, %cst_32 [1] : vector<32x128xf32> to vector<32xf32>
    %67 = vector.shape_cast %66 : vector<32xf32> to vector<32x1xf32>
    %cst_33 = arith.constant 1.280000e+02 : f32
    %68 = vector.broadcast %cst_33 : f32 to vector<32x1xf32>
    %69 = arith.divf %67, %68 : vector<32x1xf32>
    %70 = vector.broadcast %69 : vector<32x1xf32> to vector<32x128xf32>
    %71 = arith.subf %61, %70 : vector<32x128xf32>
    %72 = arith.mulf %71, %71 : vector<32x128xf32>
    %cst_34 = arith.constant dense<0.000000e+00> : vector<32xf32>
    %73 = vector.multi_reduction <add>, %72, %cst_34 [1] : vector<32x128xf32> to vector<32xf32>
    %74 = vector.shape_cast %73 : vector<32xf32> to vector<32x1xf32>
    %cst_35 = arith.constant 1.280000e+02 : f32
    %75 = vector.broadcast %cst_35 : f32 to vector<32x1xf32>
    %76 = arith.divf %74, %75 : vector<32x1xf32>
    %77 = vector.broadcast %69 : vector<32x1xf32> to vector<32x128xf32>
    %78 = arith.subf %61, %77 : vector<32x128xf32>
    %cst_36 = arith.constant 9.99999996E-13 : f32
    %79 = vector.broadcast %cst_36 : f32 to vector<32x1xf32>
    %80 = arith.addf %76, %79 : vector<32x1xf32>
    %81 = math.rsqrt %80 : vector<32x1xf32>
    %82 = vector.broadcast %81 : vector<32x1xf32> to vector<32x128xf32>
    %83 = arith.mulf %78, %82 : vector<32x128xf32>
    %84 = vector.broadcast %63 : vector<1x128xf32> to vector<32x128xf32>
    %85 = arith.mulf %83, %84 : vector<32x128xf32>
    %86 = vector.broadcast %65 : vector<1x128xf32> to vector<32x128xf32>
    %87 = arith.addf %85, %86 : vector<32x128xf32>
    %88 = arith.truncf %87 : vector<32x128xf32> to vector<32x128xbf16>
    %c0_37 = arith.constant 0 : index
    %c0_38 = arith.constant 0 : index
    %c0_39 = arith.constant 0 : index
    %89 = vector.load %arg11[%c0_37, %c0_38, %c0_39] : memref<1x128x512xbf16, #tpu.memory_space<vmem>>, vector<1x128x512xbf16>
    %90 = vector.shape_cast %89 : vector<1x128x512xbf16> to vector<128x512xbf16>
    %cst_40 = arith.constant dense<0.000000e+00> : vector<32x512xf32>
    %91 = tpu.matmul %88, %90, %cst_40 {dimension_numbers = #tpu.dot_dimension_numbers<[1], [0], [0], [1], [0, 0, 1, 1], [], []>} : vector<32x128xbf16>, vector<128x512xbf16>, vector<32x512xf32> -> vector<32x512xf32>
    %c0_41 = arith.constant 0 : index
    %c0_42 = arith.constant 0 : index
    %c0_43 = arith.constant 0 : index
    %92 = vector.load %arg12[%c0_41, %c0_42, %c0_43] : memref<1x1x512xf32, #tpu.memory_space<vmem>>, vector<1x1x512xf32>
    %93 = vector.shape_cast %92 : vector<1x1x512xf32> to vector<1x512xf32>
    %94 = vector.broadcast %93 : vector<1x512xf32> to vector<32x512xf32>
    %95 = arith.addf %91, %94 : vector<32x512xf32>
    %cst_44 = arith.constant 5.000000e-01 : f32
    %96 = vector.broadcast %cst_44 : f32 to vector<32x512xf32>
    %97 = arith.mulf %96, %95 : vector<32x512xf32>
    %cst_45 = arith.constant 0.707106769 : f32
    %98 = vector.broadcast %cst_45 : f32 to vector<32x512xf32>
    %99 = arith.mulf %95, %98 : vector<32x512xf32>
    %100 = math.absf %99 : vector<32x512xf32>
    %cst_46 = arith.constant 0.327591091 : f32
    %101 = vector.broadcast %cst_46 : f32 to vector<32x512xf32>
    %102 = arith.mulf %101, %100 : vector<32x512xf32>
    %cst_47 = arith.constant 1.000000e+00 : f32
    %103 = vector.broadcast %cst_47 : f32 to vector<32x512xf32>
    %104 = arith.addf %103, %102 : vector<32x512xf32>
    %105 = tpu.reciprocal %104 {approx = true} : vector<32x512xf32> -> vector<32x512xf32>
    %cst_48 = arith.constant 1.06140542 : f32
    %106 = vector.broadcast %cst_48 : f32 to vector<32x512xf32>
    %107 = arith.mulf %106, %105 : vector<32x512xf32>
    %cst_49 = arith.constant -1.45315206 : f32
    %108 = vector.broadcast %cst_49 : f32 to vector<32x512xf32>
    %109 = arith.addf %107, %108 : vector<32x512xf32>
    %110 = arith.mulf %109, %105 : vector<32x512xf32>
    %cst_50 = arith.constant 1.42141378 : f32
    %111 = vector.broadcast %cst_50 : f32 to vector<32x512xf32>
    %112 = arith.addf %110, %111 : vector<32x512xf32>
    %113 = arith.mulf %112, %105 : vector<32x512xf32>
    %cst_51 = arith.constant -0.284496725 : f32
    %114 = vector.broadcast %cst_51 : f32 to vector<32x512xf32>
    %115 = arith.addf %113, %114 : vector<32x512xf32>
    %116 = arith.mulf %115, %105 : vector<32x512xf32>
    %cst_52 = arith.constant 0.254829586 : f32
    %117 = vector.broadcast %cst_52 : f32 to vector<32x512xf32>
    %118 = arith.addf %116, %117 : vector<32x512xf32>
    %119 = arith.mulf %118, %105 : vector<32x512xf32>
    %cst_53 = arith.constant 0.000000e+00 : f32
    %120 = vector.broadcast %cst_53 : f32 to vector<32x512xf32>
    %121 = arith.subf %120, %100 : vector<32x512xf32>
    %122 = arith.mulf %121, %100 : vector<32x512xf32>
    %123 = math.exp %122 : vector<32x512xf32>
    %124 = arith.mulf %119, %123 : vector<32x512xf32>
    %cst_54 = arith.constant 1.000000e+00 : f32
    %125 = vector.broadcast %cst_54 : f32 to vector<32x512xf32>
    %126 = arith.subf %125, %124 : vector<32x512xf32>
    %cst_55 = arith.constant 0.000000e+00 : f32
    %127 = vector.broadcast %cst_55 : f32 to vector<32x512xf32>
    %128 = arith.cmpf oge, %99, %127 : vector<32x512xf32>
    %cst_56 = arith.constant 0.000000e+00 : f32
    %129 = vector.broadcast %cst_56 : f32 to vector<32x512xf32>
    %130 = arith.subf %129, %126 : vector<32x512xf32>
    %131 = arith.select %128, %126, %130 : vector<32x512xi1>, vector<32x512xf32>
    %cst_57 = arith.constant 1.000000e+00 : f32
    %132 = vector.broadcast %cst_57 : f32 to vector<32x512xf32>
    %133 = arith.addf %132, %131 : vector<32x512xf32>
    %134 = arith.mulf %97, %133 : vector<32x512xf32>
    %135 = arith.truncf %134 : vector<32x512xf32> to vector<32x512xbf16>
    %c0_58 = arith.constant 0 : index
    %c0_59 = arith.constant 0 : index
    %c0_60 = arith.constant 0 : index
    %136 = vector.load %arg13[%c0_58, %c0_59, %c0_60] : memref<1x512x128xbf16, #tpu.memory_space<vmem>>, vector<1x512x128xbf16>
    %137 = vector.shape_cast %136 : vector<1x512x128xbf16> to vector<512x128xbf16>
    %cst_61 = arith.constant dense<0.000000e+00> : vector<32x128xf32>
    %138 = tpu.matmul %135, %137, %cst_61 {dimension_numbers = #tpu.dot_dimension_numbers<[1], [0], [0], [1], [0, 0, 1, 1], [], []>} : vector<32x512xbf16>, vector<512x128xbf16>, vector<32x128xf32> -> vector<32x128xf32>
    %c0_62 = arith.constant 0 : index
    %c0_63 = arith.constant 0 : index
    %c0_64 = arith.constant 0 : index
    %139 = vector.load %arg14[%c0_62, %c0_63, %c0_64] : memref<1x1x128xf32, #tpu.memory_space<vmem>>, vector<1x1x128xf32>
    %140 = vector.shape_cast %139 : vector<1x1x128xf32> to vector<1x128xf32>
    %141 = vector.broadcast %140 : vector<1x128xf32> to vector<32x128xf32>
    %142 = arith.addf %138, %141 : vector<32x128xf32>
    %143 = arith.addf %87, %142 : vector<32x128xf32>
    %c0_65 = arith.constant 0 : index
    %c0_66 = arith.constant 0 : index
    %c0_67 = arith.constant 0 : index
    %144 = vector.load %arg15[%c0_65, %c0_66, %c0_67] : memref<1x1x128xf32, #tpu.memory_space<vmem>>, vector<1x1x128xf32>
    %145 = vector.shape_cast %144 : vector<1x1x128xf32> to vector<1x128xf32>
    %c0_68 = arith.constant 0 : index
    %c0_69 = arith.constant 0 : index
    %c0_70 = arith.constant 0 : index
    %146 = vector.load %arg16[%c0_68, %c0_69, %c0_70] : memref<1x1x128xf32, #tpu.memory_space<vmem>>, vector<1x1x128xf32>
    %147 = vector.shape_cast %146 : vector<1x1x128xf32> to vector<1x128xf32>
    %cst_71 = arith.constant dense<0.000000e+00> : vector<32xf32>
    %148 = vector.multi_reduction <add>, %143, %cst_71 [1] : vector<32x128xf32> to vector<32xf32>
    %149 = vector.shape_cast %148 : vector<32xf32> to vector<32x1xf32>
    %cst_72 = arith.constant 1.280000e+02 : f32
    %150 = vector.broadcast %cst_72 : f32 to vector<32x1xf32>
    %151 = arith.divf %149, %150 : vector<32x1xf32>
    %152 = vector.broadcast %151 : vector<32x1xf32> to vector<32x128xf32>
    %153 = arith.subf %143, %152 : vector<32x128xf32>
    %154 = arith.mulf %153, %153 : vector<32x128xf32>
    %cst_73 = arith.constant dense<0.000000e+00> : vector<32xf32>
    %155 = vector.multi_reduction <add>, %154, %cst_73 [1] : vector<32x128xf32> to vector<32xf32>
    %156 = vector.shape_cast %155 : vector<32xf32> to vector<32x1xf32>
    %cst_74 = arith.constant 1.280000e+02 : f32
    %157 = vector.broadcast %cst_74 : f32 to vector<32x1xf32>
    %158 = arith.divf %156, %157 : vector<32x1xf32>
    %159 = vector.broadcast %151 : vector<32x1xf32> to vector<32x128xf32>
    %160 = arith.subf %143, %159 : vector<32x128xf32>
    %cst_75 = arith.constant 9.99999996E-13 : f32
    %161 = vector.broadcast %cst_75 : f32 to vector<32x1xf32>
    %162 = arith.addf %158, %161 : vector<32x1xf32>
    %163 = math.rsqrt %162 : vector<32x1xf32>
    %164 = vector.broadcast %163 : vector<32x1xf32> to vector<32x128xf32>
    %165 = arith.mulf %160, %164 : vector<32x128xf32>
    %166 = vector.broadcast %145 : vector<1x128xf32> to vector<32x128xf32>
    %167 = arith.mulf %165, %166 : vector<32x128xf32>
    %168 = vector.broadcast %147 : vector<1x128xf32> to vector<32x128xf32>
    %169 = arith.addf %167, %168 : vector<32x128xf32>
    %c0_76 = arith.constant 0 : index
    %c0_77 = arith.constant 0 : index
    %170 = vector.load %arg17[%c0_76, %c0_77] : memref<32x128xf32, #tpu.memory_space<vmem>>, vector<32x128xf32>
    tpu.vector_store %arg17[%c0_76, %c0_77], %169 {strides = array<i32>} : memref<32x128xf32, #tpu.memory_space<vmem>>, vector<32x128xf32>,
    return
  }
  func.func @transform_0(%arg0: i32) -> (i32, i32) {
    %c0_i32 = arith.constant 0 : i32
    %c0_i32_0 = arith.constant 0 : i32
    %c0_i32_1 = arith.constant 0 : i32
    return %c0_i32, %c0_i32_0 : i32, i32
  }
  func.func @transform_1(%arg0: i32) -> (i32, i32) {
    %c0_i32 = arith.constant 0 : i32
    %c0_i32_0 = arith.constant 0 : i32
    %c0_i32_1 = arith.constant 0 : i32
    return %c0_i32, %c0_i32_0 : i32, i32
  }
  func.func @transform_2(%arg0: i32) -> (i32, i32) {
    %c0_i32 = arith.constant 0 : i32
    %c0_i32_0 = arith.constant 0 : i32
    %c0_i32_1 = arith.constant 0 : i32
    return %c0_i32, %c0_i32_0 : i32, i32
  }
  func.func @transform_3(%arg0: i32) -> (i32, i32) {
    %c0_i32 = arith.constant 0 : i32
    %c0_i32_0 = arith.constant 0 : i32
    %c0_i32_1 = arith.constant 0 : i32
    return %c0_i32, %c0_i32_0 : i32, i32
  }
  func.func @transform_4(%arg0: i32) -> (i32, i32, i32) {
    %c0_i32 = arith.constant 0 : i32
    %c0_i32_0 = arith.constant 0 : i32
    %c0_i32_1 = arith.constant 0 : i32
    return %arg0, %c0_i32, %c0_i32_0 : i32, i32, i32
  }
  func.func @transform_5(%arg0: i32) -> (i32, i32, i32) {
    %c0_i32 = arith.constant 0 : i32
    %c0_i32_0 = arith.constant 0 : i32
    %c0_i32_1 = arith.constant 0 : i32
    return %arg0, %c0_i32, %c0_i32_0 : i32, i32, i32
  }
  func.func @transform_6(%arg0: i32) -> (i32, i32, i32) {
    %c0_i32 = arith.constant 0 : i32
    %c0_i32_0 = arith.constant 0 : i32
    %c0_i32_1 = arith.constant 0 : i32
    return %arg0, %c0_i32, %c0_i32_0 : i32, i32, i32
  }
  func.func @transform_7(%arg0: i32) -> (i32, i32, i32) {
    %c0_i32 = arith.constant 0 : i32
    %c0_i32_0 = arith.constant 0 : i32
    %c0_i32_1 = arith.constant 0 : i32
    return %arg0, %c0_i32, %c0_i32_0 : i32, i32, i32
  }
  func.func @transform_8(%arg0: i32) -> (i32, i32, i32) {
    %c0_i32 = arith.constant 0 : i32
    %c0_i32_0 = arith.constant 0 : i32
    %c0_i32_1 = arith.constant 0 : i32
    return %arg0, %c0_i32, %c0_i32_0 : i32, i32, i32
  }
  func.func @transform_9(%arg0: i32) -> (i32, i32, i32) {
    %c0_i32 = arith.constant 0 : i32
    %c0_i32_0 = arith.constant 0 : i32
    %c0_i32_1 = arith.constant 0 : i32
    return %arg0, %c0_i32, %c0_i32_0 : i32, i32, i32
  }
  func.func @transform_10(%arg0: i32) -> (i32, i32, i32) {
    %c0_i32 = arith.constant 0 : i32
    %c0_i32_0 = arith.constant 0 : i32
    %c0_i32_1 = arith.constant 0 : i32
    return %arg0, %c0_i32, %c0_i32_0 : i32, i32, i32
  }
  func.func @transform_11(%arg0: i32) -> (i32, i32, i32) {
    %c0_i32 = arith.constant 0 : i32
    %c0_i32_0 = arith.constant 0 : i32
    %c0_i32_1 = arith.constant 0 : i32
    return %arg0, %c0_i32, %c0_i32_0 : i32, i32, i32
  }
  func.func @transform_12(%arg0: i32) -> (i32, i32, i32) {
    %c0_i32 = arith.constant 0 : i32
    %c0_i32_0 = arith.constant 0 : i32
    %c0_i32_1 = arith.constant 0 : i32
    return %arg0, %c0_i32, %c0_i32_0 : i32, i32, i32
  }
  func.func @transform_13(%arg0: i32) -> (i32, i32, i32) {
    %c0_i32 = arith.constant 0 : i32
    %c0_i32_0 = arith.constant 0 : i32
    %c0_i32_1 = arith.constant 0 : i32
    return %arg0, %c0_i32, %c0_i32_0 : i32, i32, i32
  }
  func.func @transform_14(%arg0: i32) -> (i32, i32, i32) {
    %c0_i32 = arith.constant 0 : i32
    %c0_i32_0 = arith.constant 0 : i32
    %c0_i32_1 = arith.constant 0 : i32
    return %arg0, %c0_i32, %c0_i32_0 : i32, i32, i32
  }
  func.func @transform_15(%arg0: i32) -> (i32, i32, i32) {
    %c0_i32 = arith.constant 0 : i32
    %c0_i32_0 = arith.constant 0 : i32
    %c0_i32_1 = arith.constant 0 : i32
    return %arg0, %c0_i32, %c0_i32_0 : i32, i32, i32
  }
  func.func @transform_16(%arg0: i32) -> (i32, i32) {
    %c0_i32 = arith.constant 0 : i32
    %c0_i32_0 = arith.constant 0 : i32
    %c0_i32_1 = arith.constant 0 : i32
    return %c0_i32, %c0_i32_0 : i32, i32
  }
}

</mosaic_0001>

<bundles_post_ra>
// kernel: _lambda_.1
= control target key start
LH: loop header
LB: loop body
LE: loop exit
PB: predicated region body
PF: predicated region fallthrough
CT: control target
= control target key end

     0   :  { %s4801_s0 = inlined_call_operand.vmem [shape: f32[32,128], index: 0, kind: input, shape index: {}]   ;;  %s4802_s1 = inlined_call_operand.vmem [shape: f32[32,32], index: 1, kind: input, shape index: {}]   ;;  %s4803_s2 = inlined_call_operand.vmem [shape: f32[1,128], index: 2, kind: input, shape index: {}]   ;;  %s4804_s3 = inlined_call_operand.vmem [shape: f32[1,128], index: 3, kind: input, shape index: {}]   ;;  %s4805_s4 = inlined_call_operand.hbm [shape: bf16[2,128,384], index: 4, kind: input, shape index: {}]   ;;  %s4806_s5 = inlined_call_operand.vmem [shape: f32[2,1,384], index: 5, kind: input, shape index: {}]   ;;  %s4807_s6 = inlined_call_operand.vmem [shape: bf16[2,128,128], index: 6, kind: input, shape index: {}]   ;;  %s4808_s7 = inlined_call_operand.vmem [shape: f32[2,1,128], index: 7, kind: input, shape index: {}]   ;;  %s4809_s8 = inlined_call_operand.vmem [shape: f32[2,1,128], index: 8, kind: input, shape index: {}]   ;;  %s4810_s9 = inlined_call_operand.vmem [shape: f32[2,1,128], index: 9, kind: input, shape index: {}]   ;;  %s4811_s10 = inlined_call_operand.vmem [shape: bf16[2,128,512], index: 10, kind: input, shape index: {}]   ;;  %s4812_s11 = inlined_call_operand.vmem [shape: f32[2,1,512], index: 11, kind: input, shape index: {}]   ;;  %s4813_s12 = inlined_call_operand.hbm [shape: bf16[2,512,128], index: 12, kind: input, shape index: {}]   ;;  %s4814_s13 = inlined_call_operand.vmem [shape: f32[2,1,128], index: 13, kind: input, shape index: {}]   ;;  %s4815_s14 = inlined_call_operand.vmem [shape: f32[2,1,128], index: 14, kind: input, shape index: {}]   ;;  %s4816_s15 = inlined_call_operand.vmem [shape: f32[2,1,128], index: 15, kind: input, shape index: {}]   ;;  %s4817_s16 = inlined_call_operand.hbm [shape: f32[32,128], index: 16, kind: output, shape index: {}]  }
   0x1   :  { %4828 = sst [smem:[#allocation18_spill]] %s4801_s0 }
   0x2   :  { %4829 = sst [smem:[#allocation19_spill]] %s4802_s1 }
   0x3   :  { %4830 = sst [smem:[#allocation20_spill]] %s4804_s3 }
   0x4   :  { %4831 = sst [smem:[#allocation21_spill]] %s4805_s4 }
   0x5   :  { %4832 = sst [smem:[#allocation22_spill]] %s4807_s6 }
   0x6   :  { %4833 = sst [smem:[#allocation23_spill]] %s4813_s12 }
   0x7   :  { %4834 = sst [smem:[#allocation24_spill]] %s4817_s16 }
   0x8   :  { %21 = vsyncpa [#allocation3], 0 }
   0x9   :  { %23 = vsyncpa [#allocation3 + $0x1], 0 }
   0xa   :  { %24 = vsyncpa [#allocation6], 0 }
   0xb   :  { %26 = vsyncpa [#allocation6 + $0x1], 0 }
   0xc   :  { %27 = vsyncpa [#allocation4], 0  ;;  %s3911_s21 = smov 0   ;;  %s3913_s22 = smov 0  }
   0xd   :  { %s3915_s23 = smov 0   ;;  %s3917_s24 = smov 0  }
   0xe LB: > { %4835 = sst [smem:[#allocation11_spill]] %s3805_s22  ;;  %s3930_s25 = sadd.s32 4294967295, %s3813_s24   ;;  %s3813_s24 = sphi %s3917_s24, %s4860_s24   ;;  %s3809_s23 = sphi %s3915_s23, %s4863_s23   ;;  %s3805_s22 = sphi %s3913_s22, %s4862_s22   ;;  %s3801_s21 = sphi %s3911_s21, %s4861_s21  }
   0xf   : > { %4836 = sst [smem:[#allocation12_spill]] %s3809_s23  ;;  %s3933_s26 = sadd.s32 1, %s3813_s24  }
  0x10   : > { %4837 = sst [smem:[#allocation13_spill]] %s3933_s26  ;;  %s121_s27 = ssub.s32 %s3813_s24, %s3933_s26 }
  0x11   : > { %s124_s28 = sadd.s32 1, %s3809_s23  ;;  %p122_p0 = scmp.eq.s32.totalorder %s121_s27, 0 }
  0x12   : > { %p131_p1 = scmp.ne.s32.totalorder %s3809_s23, %s3805_s22  ;;  %p132_p2 = scmp.eq.s32.totalorder %s3813_s24, 0 }
  0x13   : > { %p137_p3 = scmp.ne.s32.totalorder %s3805_s22, %s3801_s21  ;;  %p138_p5 = scmp.eq.s32.totalorder %s3930_s25, 0 }
  0x14   : > { %s3943_s29 = scalar_select %p122_p0, %s3809_s23, %s124_s28  }
  0x15   : > { %p133_p4 = por %p132_p2, %p131_p1  ;;  %p3407_p6 = scmp.lt.s32.totalorder %s3813_s24, 2 }
  0x16   : > { %4838 = sst [smem:[#allocation14_spill]] %s3943_s29  ;;  %p3947_p7 = por %p138_p5, %p137_p3 }
  0x17   : > { %s3952_s0 = sand.u32 1, %s3809_s23   ;;  %s3389_s18 = smul.u32 3072, %s3813_s24 }
  0x18   : > { %s4839_s30 = scalar_select %p3947_p7, 1, 0 }
  0x19   : > { %s3388_s17 = smul.u32 192, %s3952_s0  ;;  %p3956_p8 = pnand %p3407_p6, %p133_p4 }
  0x1a   : > { %s4841_s4 = sld [smem:[#allocation21_spill]]  ;;  %s481_s23 = scalar_lea.sflag [#allocation3], %s3952_s0 }
  0x1b   : > { %s484_s28 = scalar_lea.vmem [#allocation2], %s3388_s17  ;;  %p3693_p11 = pneg %p3956_p8 }
  0x1c   : > { %s491_s29 = sshll.u32 %s484_s28, 4  ;;  %s3965_s29 = int_to_ptr.vmem [resolvable:$true] %s491_s29 }
  0x20   : > { %s3963_s27 = scalar_lea.hbm %s4841_s4, %s3389_s18  ;;  %s3696_s21 = scalar_lea.hbm %s4841_s4, 6144 }
  0x21   : > { %s3691_s26 = scalar_lea.hbm %s3963_s27, 3072  ;;  %p3697_p0 = scmp.lt.s32.totalorder %s3963_s27, %s4841_s4 }
  0x22   : > { %p3692_p10 = scmp.ne.s32.totalorder %s3963_s27, %s3691_s26  ;;  %p3698_p1 = scmp.lt.s32.totalorder %s3696_s21, %s3691_s26 }
  0x24   : > { %p3694_p12 = pnand %p3693_p11, %p3692_p10  ;;  %p3699_p2 = por %p3698_p1, %p3697_p0 }
  0x26   : > { %p3695_p13 = pneg %p3694_p12 }
  0x28   : > { %p3700_p3 = pnand %p3699_p2, %p3695_p13 }
  0x2a   : > { %3703 = shalt.err (!%p3700_p3)
}
  0x2b   : > { %s3704_s17 = scalar_lea.vmem %s3965_s29, 3072  ;;  %s3815_s28 = smov [#allocation2]  }
  0x2c   : > { %p3705_p4 = scmp.ne.s32.totalorder %s3965_s29, %s3704_s17  ;;  %s3709_s20 = sshll.u32 %s3815_s28, 4  ;;  %s3710_s20 = int_to_ptr.vmem [resolvable:$false] %s3709_s20 }
  0x2d   : > { %s3711_s18 = scalar_lea.vmem %s3710_s20, 6144  ;;  %p3712_p10 = scmp.lt.s32.totalorder %s3965_s29, %s3710_s20 }
  0x2e   : > { %p3707_p5 = pnand %p3705_p4, %p3693_p11  ;;  %p3713_p12 = scmp.lt.s32.totalorder %s3711_s18, %s3704_s17 }
  0x30   : > { %p3708_p6 = pneg %p3707_p5  ;;  %p3714_p9 = por %p3713_p12, %p3712_p10 }
  0x32   : > { %p3715_p0 = pnand %p3714_p9, %p3708_p6 }
  0x34   : > { %3718 = shalt.err (!%p3715_p0)
}
  0x35   : > { %s3816_s1 = smov 192   ;;  %s3817_s16 = smov 12  }
  0x36   : > { %3403 = dma.hbm_to_vmem [thread:$0]  (!%p3956_p8), %s3963_s27, 3072, %s3965_s29, %s481_s23, %s3816_s1, %s3816_s1, %s3817_s16  }
  0x37   : > { %p586_p13 = scmp.lt.s32.totalorder %s3813_s24, 3  ;;  %s3080_s26 = sshll.u32 %s3952_s0, 8 }
  0x38   : > { %s3211_s21 = sshll.u32 %s3813_s24, 12  ;;  %p4842_p9 = scmp.ge.s32.totalorder %s3813_s24, 1 }
  0x39   : > { %s4844_s12 = sld [smem:[#allocation23_spill]]  ;;  %s553_s4 = scalar_lea.vmem [#allocation5], %s3080_s26 }
  0x3a   : > { %p4000_p1 = pnand %p4842_p9, %p586_p13  ;;  %s560_s3 = sshll.u32 %s553_s4, 4  ;;  %s4009_s3 = int_to_ptr.vmem [resolvable:$true] %s560_s3 }
  0x3b   : > { %s550_s23 = scalar_lea.sflag [#allocation6], %s3952_s0 }
  0x3f   : > { %s4007_s18 = scalar_lea.hbm %s4844_s12, %s3211_s21  ;;  %s3724_s1 = scalar_lea.hbm %s4844_s12, 8192 }
  0x40   : > { %s3719_s29 = scalar_lea.hbm %s4007_s18, 4096  ;;  %p3725_p5 = scmp.lt.s32.totalorder %s4007_s18, %s4844_s12 }
  0x41   : > { %p3720_p2 = scmp.ne.s32.totalorder %s4007_s18, %s3719_s29  ;;  %p3726_p6 = scmp.lt.s32.totalorder %s3724_s1, %s3719_s29 }
  0x43   : > { %p3722_p3 = pnand %p3720_p2, %p3693_p11  ;;  %p3727_p10 = por %p3726_p6, %p3725_p5 }
  0x45   : > { %p3723_p4 = pneg %p3722_p3 }
  0x47   : > { %p3728_p12 = pnand %p3727_p10, %p3723_p4 }
  0x49   : > { %3731 = shalt.err (!%p3728_p12)
}
  0x4a   : > { %s3732_s4 = scalar_lea.vmem %s4009_s3, 4096  ;;  %s3818_s26 = smov [#allocation5]  }
  0x4b   : > { %p3733_p0 = scmp.ne.s32.totalorder %s4009_s3, %s3732_s4  ;;  %s3737_s28 = sshll.u32 %s3818_s26, 4  ;;  %s3738_s28 = int_to_ptr.vmem [resolvable:$false] %s3737_s28 }
  0x4c   : > { %s3739_s20 = scalar_lea.vmem %s3738_s28, 8192  ;;  %p3740_p2 = scmp.lt.s32.totalorder %s4009_s3, %s3738_s28 }
  0x4d   : > { %p3735_p13 = pnand %p3733_p0, %p3693_p11  ;;  %p3741_p3 = scmp.lt.s32.totalorder %s3739_s20, %s3732_s4 }
  0x4f   : > { %p3736_p9 = pneg %p3735_p13  ;;  %p3742_p7 = por %p3741_p3, %p3740_p2 }
  0x51   : > { %p3743_p5 = pnand %p3742_p7, %p3736_p9 }
  0x53   : > { %3746 = shalt.err (!%p3743_p5)
}
  0x54   : > { %s3819_s29 = smov 64   ;;  %s3820_s24 = smov 4  }
  0x55   : > { %3406 = dma.hbm_to_vmem [thread:$0]  (!%p3956_p8), %s4007_s18, 4096, %s4009_s3, %s550_s23, %s3819_s29, %s3819_s29, %s3820_s24  }
  0x56   : > { %590 = sbr.rel (%p4000_p1) target bundleno = 2975 (0xb9f), region = 84 }
  0x5b   : > { %s592_s27 = sand.u32 1, %s3805_s22   ;;  %p4845_p7 = scmp.ne.s32.totalorder %s4839_s30, 0 }
  0x5c   : > { %s3390_s1 = smul.u32 192, %s592_s27  ;;  %s593_s16 = scalar_lea.sflag [#allocation3], %s592_s27 }
  0x5e   : > { %s4039_s21 = scalar_lea.vmem [#allocation2], %s3390_s1 }
  0x5f   : > { %3788 = dma.done.wait (%p4845_p7), %s593_s16, 3072  }
  0x60   : > { %3790 = vsyncadd (%p4845_p7), %s593_s16, 4294964224  ;;  %s3084_s4 = sshll.u32 %s592_s27, 8  ;;  %s602_s19 = scalar_lea.sflag [#allocation6], %s592_s27 }
  0x61   : > { %s4045_s0 = scalar_lea.vmem [#allocation5], %s3084_s4 }
  0x62   : > { %4846 = sst [smem:[#allocation15_spill]] %s4045_s0 }
  0x63   : > { %3792 = dma.done.wait (%p4845_p7), %s602_s19, 4096  }
  0x64   : > { %3794 = vsyncadd (%p4845_p7), %s602_s19, 4294963200  ;;  %p690_p8 = scmp.lt.s32.totalorder %s3930_s25, 1  ;;  %s4847_s6 = sld [smem:[#allocation22_spill]] }
  0x65   : > { %p3090_p11 = scmp.ne.s32.totalorder %s3930_s25, 0 }
  0x66   : > { %s4053_s3 = scalar_select %p690_p8, %s3930_s25, 1 }
  0x67   : > { %s4848_s29 = sld [smem:[#allocation18_spill]] (!%p3090_p11) }
  0x68   : > { %s3391_s17 = smul.u32 3, %s4053_s3  ;;  %s3212_s18 = sshll.u32 %s4053_s3, 6 }
  0x69   : > { %s3213_s23 = sshll.u32 %s4053_s3, 8  ;;  %s3089_s28 = sshll.u32 %s4053_s3, 2 }
  0x6a   : > { %s4060_s26 = scalar_lea.vmem %s4847_s6, %s3212_s18  ;;  %s4069_s1 = scalar_lea.vmem %s4806_s5, %s3391_s17 }
  0x6b   : > { %s4083_s6 = scalar_lea.vmem %s4811_s10, %s3213_s23  ;;  %s4089_s17 = scalar_lea.vmem %s4812_s11, %s3089_s28 }
  0x6c   : > { %s719_s16 = scalar_lea.vmem %s4814_s13, %s4053_s3  ;;  %s722_s12 = scalar_lea.vmem %s4815_s14, %s4053_s3 }
  0x6d   : > { %s725_s18 = scalar_lea.vmem %s4816_s15, %s4053_s3  ;;  %730 = sbr.rel (%p3090_p11) target bundleno = 430 (0x1ae), region = 96 }
  0x6e   : > { %s4849_s28 = sld [smem:[#allocation20_spill]] (!%p3090_p11) }
  0x72   : > { %v731_v0 = vld [vmem:[%s4848_s29] sm:$0xff]  ;;  %v733_v1 = vld [vmem:[%s4848_s29 + $0x10] sm:$0xff]  ;;  %v732_v2 = vld [vmem:[%s4848_s29 + $0x8] sm:$0xff] }
  0x73   : > { %737 = vadd.xlane.f32.xlu0 %v731_v0  ;;  %741 = vadd.xlane.f32.xlu1 %v733_v1  ;;  %v734_v3 = vld [vmem:[%s4848_s29 + $0x18] sm:$0xff]  ;;  %v3091_v33 = vld [vmem:[%s4803_s2] ss:$0 sm:$0xff] }
  0x74   : > { %v3092_v35 = vld [vmem:[%s4849_s28] ss:$0 sm:$0xff] }
  0x77   : > { %739 = vadd.xlane.f32.xlu0 %v732_v2  ;;  %743 = vadd.xlane.f32.xlu1 %v734_v3 }
  0xfc   : > { %v738_v4 = vpop.xlane.xlu0 %737  ;;  %v742_v5 = vpop.xlane.xlu1 %741 }
  0xfd   : > { %v746_v6 = vmul.f32 0.0078125, %v738_v4  ;;  %v748_v7 = vmul.f32 0.0078125, %v742_v5 }
  0xff   : > { %v750_v8 = vsub.f32 %v731_v0, %v746_v6  ;;  %v752_v9 = vsub.f32 %v733_v1, %v748_v7 }
 0x100   : > { %v740_v10 = vpop.xlane.xlu0 %739  ;;  %v744_v11 = vpop.xlane.xlu1 %743 }
 0x101   : > { %v747_v12 = vmul.f32 0.0078125, %v740_v10  ;;  %v754_v13 = vmul.f32 %v750_v8, %v750_v8  ;;  %v749_v14 = vmul.f32 0.0078125, %v744_v11  ;;  %v756_v17 = vmul.f32 %v752_v9, %v752_v9 }
 0x103   : > { %v751_v15 = vsub.f32 %v732_v2, %v747_v12  ;;  %758 = vadd.xlane.f32.xlu0 %v754_v13  ;;  %v753_v16 = vsub.f32 %v734_v3, %v749_v14 }
 0x105   : > { %v755_v18 = vmul.f32 %v751_v15, %v751_v15  ;;  %v757_v19 = vmul.f32 %v753_v16, %v753_v16 }
 0x107   : > { %762 = vadd.xlane.f32.xlu0 %v756_v17  ;;  %760 = vadd.xlane.f32.xlu1 %v755_v18 }
 0x10b   : > { %764 = vadd.xlane.f32.xlu1 %v757_v19 }
 0x18c   : > { %v759_v20 = vpop.xlane.xlu0 %758 }
 0x18d   : > { %v766_v21 = vmul.f32 0.0078125, %v759_v20 }
 0x18f   : > { %v770_v22 = vadd.f32 1e-12, %v766_v21 }
 0x190   : > { %v761_v23 = vpop.xlane.xlu1 %760  ;;  %v763_v24 = vpop.xlane.xlu0 %762 }
 0x191   : > { %3451 = vrsqrt.f32 %v770_v22  ;;  %v767_v25 = vmul.f32 0.0078125, %v761_v23  ;;  %v768_v26 = vmul.f32 0.0078125, %v763_v24 }
 0x193   : > { %v771_v27 = vadd.f32 1e-12, %v767_v25  ;;  %v772_v28 = vadd.f32 1e-12, %v768_v26 }
 0x194   : > { %v765_v29 = vpop.xlane.xlu1 %764 }
 0x195   : > { %3453 = vrsqrt.f32 %v771_v27  ;;  %v769_v30 = vmul.f32 0.0078125, %v765_v29 }
 0x196   : > { %3455 = vrsqrt.f32 %v772_v28 }
 0x197   : > { %v773_v31 = vadd.f32 1e-12, %v769_v30 }
 0x199   : > { %3457 = vrsqrt.f32 %v773_v31 }
 0x19e   : > { %v3452_v32 = vpop.eup %3451 }
 0x19f   : > { %v778_v34 = vmul.f32 %v3452_v32, %v750_v8 }
 0x1a1   : > { %v788_v36 = vmul.f32 %v3091_v33, %v778_v34 }
 0x1a2   : > { %v3454_v37 = vpop.eup %3453 }
 0x1a3   : > { %v3456_v38 = vpop.eup %3455  ;;  %v798_v39 = vadd.f32 %v3092_v35, %v788_v36  ;;  %v779_v40 = vmul.f32 %v3454_v37, %v751_v15 }
 0x1a4   : > { %v780_v41 = vmul.f32 %v3456_v38, %v752_v9 }
 0x1a5   : > { %802 = vst [vmem:[#allocation7] sm:$0xff] %v798_v39  ;;  %v789_v42 = vmul.f32 %v3091_v33, %v779_v40 }
 0x1a6   : > { %v3458_v43 = vpop.eup %3457  ;;  %v790_v44 = vmul.f32 %v3091_v33, %v780_v41 }
 0x1a7   : > { %v799_v45 = vadd.f32 %v3092_v35, %v789_v42  ;;  %v781_v46 = vmul.f32 %v3458_v43, %v753_v16 }
 0x1a8   : > { %v800_v47 = vadd.f32 %v3092_v35, %v790_v44 }
 0x1a9   : > { %803 = vst [vmem:[#allocation7 + $0x8] sm:$0xff] %v799_v45  ;;  %v791_v48 = vmul.f32 %v3091_v33, %v781_v46 }
 0x1aa   : > { %804 = vst [vmem:[#allocation7 + $0x10] sm:$0xff] %v800_v47 }
 0x1ab   : > { %v801_v49 = vadd.f32 %v3092_v35, %v791_v48 }
 0x1ad   : > { %805 = vst [vmem:[#allocation7 + $0x18] sm:$0xff] %v801_v49 }
 0x1ae PF: > { %v3459_v50 = vld [vmem:[%s4039_s21 + $0xac] ss:$12 sps:$4 sm:$0xff]   ;;  %v3461_v51 = vld [vmem:[%s4039_s21 + $0xa8] ss:$12 sps:$4 sm:$0xff]   ;;  %v3821_v52 = vmov 0   ;;  %v4130_v58 = vld [vmem:[#allocation7] sm:$0xff]  ;;  %v846_v9 = vlaneseq  ;;  %s4851_s28 = scalar_lea.vmem %s4808_s7, %s4053_s3 }
 0x1af   : > { %1021 = vmatprep.mubr.bf16.mxu0 %v3821_v52  ;;  %989 = vmatprep.subr.bf16.mxu0 %v3459_v50  ;;  %v3462_v53 = vld [vmem:[%s4039_s21 + $0x94] ss:$12 sps:$4 sm:$0xff]   ;;  %v3464_v54 = vld [vmem:[%s4039_s21 + $0x90] ss:$12 sps:$4 sm:$0xff]   ;;  %v3467_v56 = vld [vmem:[%s4039_s21 + $0x78] ss:$12 sps:$4 sm:$0xff]  }
 0x1b0   : > { %990 = vmatpush1.bf16.msra.mxu0 %v3461_v51  ;;  %v3465_v55 = vld [vmem:[%s4039_s21 + $0x7c] ss:$12 sps:$4 sm:$0xff]   ;;  %v3468_v57 = vld [vmem:[%s4039_s21 + $0x64] ss:$12 sps:$4 sm:$0xff]   ;;  %v3470_v59 = vld [vmem:[%s4039_s21 + $0x60] ss:$12 sps:$4 sm:$0xff]  }
 0x1b1   : > { %991 = vmatprep.subr.bf16.mxu0 %v3462_v53  ;;  %v4133_v60 = vld [vmem:[#allocation7 + $0x8] sm:$0xff]  ;;  %v3474_v0 = vld [vmem:[%s4039_s21 + $0x34] ss:$12 sps:$4 sm:$0xff]   ;;  %v3476_v1 = vld [vmem:[%s4039_s21 + $0x30] ss:$12 sps:$4 sm:$0xff]   ;;  %v4155_v10 = vshrl.u32 %v846_v9, 7 }
 0x1b2   : > { %v3471_v61 = vld [vmem:[%s4039_s21 + $0x4c] ss:$12 sps:$4 sm:$0xff]   ;;  %v810_v62 = vpack.c.bf16 %v4133_v60, %v4130_v58  ;;  %v3473_v63 = vld [vmem:[%s4039_s21 + $0x48] ss:$12 sps:$4 sm:$0xff]   ;;  %v3480_v4 = vld [vmem:[%s4039_s21 + $0x4] ss:$12 sps:$4 sm:$0xff]  }
 0x1b3   : > { %v3477_v2 = vld [vmem:[%s4039_s21 + $0x1c] ss:$12 sps:$4 sm:$0xff]   ;;  %v3479_v3 = vld [vmem:[%s4039_s21 + $0x18] ss:$12 sps:$4 sm:$0xff]   ;;  %v3482_v5 = vld [vmem:[%s4039_s21] ss:$12 sps:$4 sm:$0xff]  }
 0x1b4   : > { %992 = vmatpush1.bf16.msra.mxu0 %v3464_v54  ;;  %3324 = vmatprep.mubr.bf16.mxu1 %v810_v62  ;;  %v4145_v6 = vld [vmem:[#allocation7 + $0x10] sm:$0xff]  ;;  %v4147_v7 = vld [vmem:[#allocation7 + $0x18] sm:$0xff]  ;;  %v848_v11 = vsub.s32 0, %v4155_v10  ;;  %v4159_v12 = vld [vmem:[%s4069_s1] sm:$0x7]  ;;  %vm1118_vm0 = vcmask 523264   ;;  %s4852_s1 = scalar_lea.vmem %s4809_s8, %s4053_s3 }
 0x1b5   : > { %993 = vmatprep.subr.bf16.mxu0 %v3465_v55  ;;  %v4152_v8 = vpack.c.bf16 %v4147_v7, %v4145_v6  ;;  %v852_v22 = vsub.s32 1, %v4155_v10  ;;  %s3822_s20 = smov 64   ;;  %v3483_v38 = vld [vmem:[%s4039_s21 + $0xb0] ss:$12 sps:$4 sm:$0xff]   ;;  %v3484_v39 = vld [vmem:[%s4039_s21 + $0x98] ss:$12 sps:$4 sm:$0xff]  }
 0x1b6   : > { %v849_v14 = vrot.slane %v4159_v12, %v848_v11  ;;  %3308 = vmatprep.subr.bf16.mxu1 %v3483_v38  ;;  %v3485_v40 = vld [vmem:[%s4039_s21 + $0x80] ss:$12 sps:$4 sm:$0xff]   ;;  %v3486_v41 = vld [vmem:[%s4039_s21 + $0x68] ss:$12 sps:$4 sm:$0xff]   ;;  %v3487_v43 = vld [vmem:[%s4039_s21 + $0x50] ss:$12 sps:$4 sm:$0xff]  }
 0x1b7   : > { %v853_v25 = vrot.slane %v4159_v12, %v852_v22  ;;  %3309 = vmatpush3.bf16.msra.mxu1 %v3483_v38  ;;  %v3488_v44 = vld [vmem:[%s4039_s21 + $0x38] ss:$12 sps:$4 sm:$0xff]   ;;  %v3489_v46 = vld [vmem:[%s4039_s21 + $0x20] ss:$12 sps:$4 sm:$0xff]   ;;  %v3490_v49 = vld [vmem:[%s4039_s21 + $0x8] ss:$12 sps:$4 sm:$0xff]   ;;  %s4853_s21 = scalar_lea.vmem %s4810_s9, %s4053_s3 }
 0x1b8   : > { %994 = vmatpush1.bf16.msra.mxu0 %v3467_v56  ;;  %3310 = vmatprep.subr.bf16.mxu1 %v3484_v39  ;;  %s4850_s19 = sld [smem:[#allocation19_spill]]  ;;  %vm1180_vm1 = vcmask 261120   ;;  %s3823_s3 = smov [#allocation7]  }
 0x1b9   : > { %995 = vmatprep.subr.bf16.mxu0 %v3468_v57  ;;  %s4854_s0 = sld [smem:[#allocation15_spill]]  ;;  %p3408_p1 = scmp.eq.s32.totalorder %s3930_s25, 1 }
 0x1bb   : > { %3311 = vmatpush3.bf16.msra.mxu1 %v3484_v39 }
 0x1bc   : > { %996 = vmatpush1.bf16.msra.mxu0 %v3470_v59  ;;  %3312 = vmatprep.subr.bf16.mxu1 %v3485_v40 }
 0x1bd   : > { %997 = vmatprep.subr.bf16.mxu0 %v3471_v61 }
 0x1be   : > { %v1097_v54 = vld [vmem:[%s4850_s19] sm:$0xff]  ;;  %v1099_v55 = vld [vmem:[%s4850_s19 + $0x10] sm:$0xff]  ;;  %v1098_v61 = vld [vmem:[%s4850_s19 + $0x8] sm:$0xff] }
 0x1bf   : > { %3313 = vmatpush3.bf16.msra.mxu1 %v3485_v40 }
 0x1c0   : > { %998 = vmatpush1.bf16.msra.mxu0 %v3473_v63  ;;  %3314 = vmatprep.subr.bf16.mxu1 %v3486_v41 }
 0x1c1   : > { %999 = vmatprep.subr.bf16.mxu0 %v3474_v0  ;;  %v1100_v0 = vld [vmem:[%s4850_s19 + $0x18] sm:$0xff] }
 0x1c3   : > { %3315 = vmatpush3.bf16.msra.mxu1 %v3486_v41  ;;  %v856_v41 = vsub.s32 2, %v4155_v10 }
 0x1c4   : > { %1000 = vmatpush1.bf16.msra.mxu0 %v3476_v1  ;;  %3316 = vmatprep.subr.bf16.mxu1 %v3487_v43 }
 0x1c5   : > { %1001 = vmatprep.subr.bf16.mxu0 %v3477_v2 }
 0x1c7   : > { %3317 = vmatpush3.bf16.msra.mxu1 %v3487_v43 }
 0x1c8   : > { %1002 = vmatpush1.bf16.msra.mxu0 %v3479_v3  ;;  %3318 = vmatprep.subr.bf16.mxu1 %v3488_v44 }
 0x1c9   : > { %1003 = vmatprep.subr.bf16.mxu0 %v3480_v4 }
 0x1cb   : > { %3319 = vmatpush3.bf16.msra.mxu1 %v3488_v44 }
 0x1cc   : > { %1004 = vmatpush1.bf16.msra.mxu0 %v3482_v5  ;;  %3320 = vmatprep.subr.bf16.mxu1 %v3489_v46 }
 0x1cf   : > { %1022 = vmatmul.mubr.bf16.vlgmr.msra.gmra.mxu0 %v810_v62  ;;  %3321 = vmatpush3.bf16.msra.mxu1 %v3489_v46  ;;  %v857_v46 = vrot.slane %v4159_v12, %v856_v41  ;;  %v3491_v12 = vld [vmem:[%s4060_s26 + $0x18] sm:$0xff]  }
 0x1d0   : > { %1031 = vmatprep.mubr.bf16.mxu0 %v3821_v52  ;;  %3322 = vmatprep.subr.bf16.mxu1 %v3490_v49 }
 0x1d3   : > { %3323 = vmatpush3.bf16.msra.mxu1 %v3490_v49 }
 0x1d6   : > { %3325 = vmatmul.mubr.bf16.vlgmr.msra.gmra.mxu1 %v4152_v8 }
 0x1d7   : > { %1032 = vmatmul.mubr.bf16.gmra.mxu0 %v4152_v8 }
 0x28f   : > { %v1023_v13 = vpop.f32.mrf.mxu0 }
 0x290   : > { %v1024_v17 = vadd.f32 %v1023_v13, %v849_v14 }
 0x291   : > { %v1025_v15 = vpop.f32.mrf.mxu0 }
 0x292   : > { %v1026_v33 = vadd.f32 %v1025_v15, %v853_v25 }
 0x293   : > { %v1027_v16 = vpop.f32.mrf.mxu0 }
 0x294   : > { %v1028_v18 = vadd.f32 %v1027_v16, %v849_v14 }
 0x295   : > { %v1029_v19 = vpop.f32.mrf.mxu0 }
 0x296   : > { %v1091_v20 = vpack.c.bf16 %v1028_v18, %v1024_v17  ;;  %v1030_v29 = vadd.f32 %v1029_v19, %v853_v25 }
 0x297   : > { %v1033_v21 = vpop.f32.mrf.mxu0 }
 0x298   : > { %1375 = vrot.lane.b32.xlu1 %v1091_v20, %s3822_s20  ;;  %3332 = vmatprep.mubr.msk.bf16.mxu0 %vm1118_vm0, %v1091_v20  ;;  %v1034_v26 = vadd.f32 %v1033_v21, %v849_v14  ;;  %v1092_v35 = vpack.c.bf16 %v1030_v29, %v1026_v33 }
 0x299   : > { %v1035_v23 = vpop.f32.mrf.mxu0 }
 0x29a   : > { %v1036_v30 = vadd.f32 %v1035_v23, %v853_v25  ;;  %v1126_v37 = vsel %vm1118_vm0, %v1092_v35, 0 }
 0x29b   : > { %v1037_v24 = vpop.f32.mrf.mxu0 }
 0x29c   : > { %v1038_v27 = vadd.f32 %v1037_v24, %v849_v14 }
 0x29d   : > { %v1039_v28 = vpop.f32.mrf.mxu0 }
 0x29e   : > { %v1094_v31 = vpack.c.bf16 %v1038_v27, %v1034_v26  ;;  %v1040_v32 = vadd.f32 %v1039_v28, %v853_v25 }
 0x2a0   : > { %v1095_v34 = vpack.c.bf16 %v1040_v32, %v1036_v30  ;;  %1377 = vrot.lane.b32.xlu1 %v1094_v31, %s3822_s20 }
 0x2a2   : > { %1383 = vrot.lane.b32.xlu0 %v1095_v34, %s3822_s20  ;;  %3384 = vmatprep.subr.msk.bf16.mxu0 %vm1118_vm0, %v1095_v34  ;;  %v1129_v36 = vsel %vm1118_vm0, %v1095_v34, 0 }
 0x2a3   : > { %3329 = vmatpush3.bf16.xpose.msra.mxu0 %v1129_v36 }
 0x2a4   : > { %3385 = vmatprep.subr.msk.bf16.mxu0 %vm1118_vm0, %v1092_v35 }
 0x2a6   : > { %1381 = vrot.lane.b32.xlu0 %v1092_v35, %s3822_s20 }
 0x2ab   : > { %3331 = vmatpush3.bf16.xpose.msra.mxu0 %v1126_v37 }
 0x2b2   : > { %3333 = vmatmul.mubr.msk.bf16.vlgmr.msra.gmra.mxu0 %vm1118_vm0, %v1094_v31 }
 0x30a   : > { %v1376_v42 = vpop.permute.xlu1 %1375 }
 0x30b   : > { %3360 = vmatprep.mubr.msk.bf16.mxu0 %vm1118_vm0, %v1376_v42  ;;  %v3326_v42 = vpop.f32.mrf.mxu1 }
 0x312   : > { %v1378_v51 = vpop.permute.xlu1 %1377 }
 0x314   : > { %v1384_v45 = vpop.permute.xlu0 %1383 }
 0x315   : > { %v1395_v47 = vsel %vm1118_vm0, %v1384_v45, 0  ;;  %3386 = vmatprep.subr.msk.bf16.mxu0 %vm1118_vm0, %v1384_v45 }
 0x316   : > { %3357 = vmatpush3.bf16.xpose.msra.mxu0 %v1395_v47  ;;  %v1076_v47 = vpop.f32.mrf.mxu1 }
 0x318   : > { %v1382_v48 = vpop.permute.xlu0 %1381 }
 0x319   : > { %3387 = vmatprep.subr.msk.bf16.mxu0 %vm1118_vm0, %v1382_v48  ;;  %v1392_v50 = vsel %vm1118_vm0, %v1382_v48, 0  ;;  %v1085_v48 = vadd.f32 %v3326_v42, %v857_v46 }
 0x31e   : > { %3359 = vmatpush3.bf16.xpose.msra.mxu0 %v1392_v50  ;;  %v3327_v50 = vpop.f32.mrf.mxu1 }
 0x325   : > { %3361 = vmatmul.mubr.msk.bf16.vlgmr.msra.gmra.mxu0 %vm1118_vm0, %v1378_v51  ;;  %v1088_v51 = vadd.f32 %v3327_v50, %v857_v46 }
 0x372   : > { %v3334_v53 = vpop.f32.mrf.mxu0 }
 0x373   : > { %v1174_v62 = vadd.f32 %v3334_v53, %v1099_v55  ;;  %v1077_v53 = vadd.f32 %v1076_v47, %v857_v46 }
 0x374   : > { %v1165_v56 = vpop.f32.mrf.mxu0 }
 0x375   : > { %v1166_v57 = vadd.f32 %v1165_v56, %v1097_v54  ;;  %v1187_v5 = vsel %vm1180_vm1, %v1174_v62, -inf }
 0x376   : > { %v3335_v59 = vpop.f32.mrf.mxu0 }
 0x377   : > { %v1181_v63 = vsel %vm1180_vm1, %v1166_v57, -inf  ;;  %v1177_v3 = vadd.f32 %v3335_v59, %v1100_v0 }
 0x378   : > { %v1168_v1 = vpop.f32.mrf.mxu0  ;;  %1182 = vmax.xlane.f32.xlu0 %v1181_v63 }
 0x379   : > { %v1169_v2 = vadd.f32 %v1168_v1, %v1098_v61  ;;  %v1190_v8 = vsel %vm1180_vm1, %v1177_v3, -inf }
 0x37b   : > { %v1184_v4 = vsel %vm1180_vm1, %v1169_v2, -inf }
 0x37c   : > { %1185 = vmax.xlane.f32.xlu1 %v1184_v4  ;;  %1188 = vmax.xlane.f32.xlu0 %v1187_v5 }
 0x380   : > { %1191 = vmax.xlane.f32.xlu0 %v1190_v8 }
 0x3e5   : > { %v3362_v25 = vpop.f32.mrf.mxu0 }
 0x3e6   : > { %v1440_v39 = vadd.f32 %v3362_v25, %v1099_v55  ;;  %v1079_v55 = vpop.f32.mrf.mxu1 }
 0x3e7   : > { %v1431_v26 = vpop.f32.mrf.mxu0  ;;  %v1080_v56 = vadd.f32 %v1079_v55, %v857_v46 }
 0x3e8   : > { %v1432_v33 = vadd.f32 %v1431_v26, %v1097_v54  ;;  %v1452_v45 = vsel %vm1180_vm1, %v1440_v39, -inf  ;;  %v4233_v54 = vpack.c.bf16 %v1088_v51, %v1085_v48 }
 0x3e9   : > { %v3363_v29 = vpop.f32.mrf.mxu0 }
 0x3ea   : > { %v1446_v40 = vsel %vm1180_vm1, %v1432_v33, -inf  ;;  %v1443_v43 = vadd.f32 %v3363_v29, %v1100_v0  ;;  %3336 = vmatprep.subr.bf16.mxu1 %v4233_v54  ;;  %v3492_v29 = vld [vmem:[%s4060_s26 + $0x10] sm:$0xff]  }
 0x3eb   : > { %v1434_v34 = vpop.f32.mrf.mxu0  ;;  %3337 = vmatpush3.bf16.msra.mxu1 %v4233_v54 }
 0x3ec   : > { %v1435_v37 = vadd.f32 %v1434_v34, %v1098_v61  ;;  %v1455_v49 = vsel %vm1180_vm1, %v1443_v43, -inf }
 0x3ee   : > { %v1449_v44 = vsel %vm1180_vm1, %v1435_v37, -inf }
 0x401   : > { %v1183_v9 = vpop.xlane.xlu0 %1182 }
 0x402   : > { %v1193_v13 = vsub.f32 %v1166_v57, %v1183_v9  ;;  %v4237_v57 = vpack.c.bf16 %v1080_v56, %v1077_v53 }
 0x404   : > { %v1197_v14 = vmul.f32 1.442695, %v1193_v13  ;;  %3338 = vmatprep.subr.bf16.mxu1 %v4237_v57 }
 0x405   : > { %v1186_v15 = vpop.xlane.xlu1 %1185  ;;  %v1189_v16 = vpop.xlane.xlu0 %1188  ;;  %3339 = vmatpush3.bf16.msra.mxu1 %v4237_v57 }
 0x406   : > { %3579 = vpow2.f32 %v1197_v14  ;;  %v1194_v17 = vsub.f32 %v1169_v2, %v1186_v15  ;;  %v1195_v18 = vsub.f32 %v1174_v62, %v1189_v16  ;;  %3344 = vmatprep.subr.bf16.mxu1 %v3491_v12 }
 0x408   : > { %v1199_v19 = vmul.f32 1.442695, %v1194_v17  ;;  %v1201_v20 = vmul.f32 1.442695, %v1195_v18 }
 0x409   : > { %v1192_v21 = vpop.xlane.xlu0 %1191 }
 0x40a   : > { %3581 = vpow2.f32 %v1199_v19  ;;  %v1196_v23 = vsub.f32 %v1177_v3, %v1192_v21 }
 0x40b   : > { %3583 = vpow2.f32 %v1201_v20 }
 0x40c   : > { %v1203_v24 = vmul.f32 1.442695, %v1196_v23 }
 0x40e   : > { %3585 = vpow2.f32 %v1203_v24 }
 0x413   : > { %v4209_v27 = vpop.eup %3579 }
 0x414   : > { %v1205_v28 = vsel %vm1180_vm1, %v4209_v27, 0.0 }
 0x415   : > { %1206 = vadd.xlane.f32.xlu1 %v1205_v28 }
 0x417   : > { %v4213_v30 = vpop.eup %3581 }
 0x418   : > { %v4215_v31 = vpop.eup %3583  ;;  %v1208_v32 = vsel %vm1180_vm1, %v4213_v30, 0.0 }
 0x419   : > { %1209 = vadd.xlane.f32.xlu0 %v1208_v32  ;;  %v1211_v35 = vsel %vm1180_vm1, %v4215_v31, 0.0 }
 0x41a   : > { %1212 = vadd.xlane.f32.xlu1 %v1211_v35 }
 0x41b   : > { %v4221_v36 = vpop.eup %3585 }
 0x41c   : > { %v1214_v38 = vsel %vm1180_vm1, %v4221_v36, 0.0 }
 0x41d   : > { %1215 = vadd.xlane.f32.xlu0 %v1214_v38  ;;  %v3494_v38 = vld [vmem:[%s4060_s26] sm:$0xff]  }
 0x41e   : > { %1447 = vmax.xlane.f32.xlu1 %v1446_v40 }
 0x421   : > { %1450 = vmax.xlane.f32.xlu0 %v1449_v44 }
 0x422   : > { %1453 = vmax.xlane.f32.xlu1 %v1452_v45 }
 0x425   : > { %1456 = vmax.xlane.f32.xlu0 %v1455_v49 }
 0x49e   : > { %v1207_v59 = vpop.xlane.xlu1 %1206 }
 0x49f   : > { %3587 = vrcp.f32 %v1207_v59 }
 0x4a2   : > { %v1210_v61 = vpop.xlane.xlu0 %1209 }
 0x4a3   : > { %v1213_v62 = vpop.xlane.xlu1 %1212  ;;  %3589 = vrcp.f32 %v1210_v61 }
 0x4a4   : > { %3591 = vrcp.f32 %v1213_v62 }
 0x4a6   : > { %v1216_v63 = vpop.xlane.xlu0 %1215 }
 0x4a7   : > { %v1448_v0 = vpop.xlane.xlu1 %1447  ;;  %3593 = vrcp.f32 %v1216_v63 }
 0x4a8   : > { %v1458_v1 = vsub.f32 %v1432_v33, %v1448_v0  ;;  %v3495_v0 = vld [vmem:[%s4060_s26 + $0x38] sm:$0xff]  }
 0x4a9   : > { %3372 = vmatprep.subr.bf16.mxu0 %v3495_v0 }
 0x4aa   : > { %v1451_v2 = vpop.xlane.xlu0 %1450  ;;  %v1462_v9 = vmul.f32 1.442695, %v1458_v1  ;;  %3373 = vmatpush3.bf16.msra.mxu0 %v3495_v0  ;;  %v3496_v1 = vld [vmem:[%s4060_s26 + $0x30] sm:$0xff]  }
 0x4ab   : > { %v1454_v3 = vpop.xlane.xlu1 %1453  ;;  %v1459_v5 = vsub.f32 %v1435_v37, %v1451_v2  ;;  %v3493_v37 = vld [vmem:[%s4060_s26 + $0x8] sm:$0xff]   ;;  %3374 = vmatprep.subr.bf16.mxu0 %v3496_v1  ;;  %v3519_v0 = vld [vmem:[%s4083_s6 + $0x84] ss:$16 sps:$4 sm:$0xff]  }
 0x4ac   : > { %v1460_v4 = vsub.f32 %v1440_v39, %v1454_v3  ;;  %v3588_v8 = vpop.eup %3587  ;;  %v3497_v2 = vld [vmem:[%s4060_s26 + $0x28] sm:$0xff]   ;;  %v3498_v3 = vld [vmem:[%s4060_s26 + $0x20] sm:$0xff]  }
 0x4ad   : > { %v1464_v17 = vmul.f32 1.442695, %v1459_v5  ;;  %v1221_v19 = vmul.f32 %v3588_v8, %v4209_v27 }
 0x4ae   : > { %v1466_v13 = vmul.f32 1.442695, %v1460_v4  ;;  %v1457_v14 = vpop.xlane.xlu0 %1456  ;;  %3375 = vmatpush3.bf16.msra.mxu0 %v3496_v1  ;;  %v3522_v1 = vld [vmem:[%s4083_s6 + $0x8c] ss:$16 sps:$4 sm:$0xff]  }
 0x4af   : > { %v1461_v15 = vsub.f32 %v1443_v43, %v1457_v14  ;;  %3376 = vmatprep.subr.bf16.mxu0 %v3497_v2 }
 0x4b0   : > { %v3590_v16 = vpop.eup %3589  ;;  %3595 = vpow2.f32 %v1466_v13 }
 0x4b1   : > { %v1468_v18 = vmul.f32 1.442695, %v1461_v15  ;;  %v1222_v20 = vmul.f32 %v3590_v16, %v4213_v30  ;;  %v3592_v21 = vpop.eup %3591  ;;  %3597 = vpow2.f32 %v1462_v9 }
 0x4b2   : > { %v1223_v25 = vmul.f32 %v3592_v21, %v4215_v31  ;;  %3377 = vmatpush3.bf16.msra.mxu0 %v3497_v2  ;;  %v3517_v2 = vld [vmem:[%s4083_s6 + $0x80] ss:$16 sps:$4 sm:$0xff]  }
 0x4b3   : > { %3599 = vpow2.f32 %v1468_v18  ;;  %v1225_v23 = vpack.c.bf16 %v1222_v20, %v1221_v19  ;;  %3378 = vmatprep.subr.bf16.mxu0 %v3498_v3  ;;  %v3127_v19 = vld [vmem:[%s4851_s28] ss:$0 sm:$0xff] }
 0x4b4   : > { %v3594_v24 = vpop.eup %3593  ;;  %3601 = vpow2.f32 %v1464_v17 }
 0x4b5   : > { %3340 = vmatprep.mubr.msk.bf16.mxu1 %vm1180_vm1, %v1225_v23  ;;  %v1224_v26 = vmul.f32 %v3594_v24, %v4221_v36 }
 0x4b6   : > { %3379 = vmatpush3.bf16.msra.mxu0 %v3498_v3  ;;  %v3520_v3 = vld [vmem:[%s4083_s6 + $0x88] ss:$16 sps:$4 sm:$0xff]  }
 0x4b7   : > { %v1226_v28 = vpack.c.bf16 %v1224_v26, %v1223_v25 }
 0x4b9   : > { %3341 = vmatmul.mubr.msk.bf16.vlgmr.msra.gmra.mxu1 %vm1180_vm1, %v1226_v28 }
 0x4ba   : > { %3345 = vmatpush3.bf16.msra.mxu1 %v3491_v12 }
 0x4bb   : > { %3346 = vmatprep.subr.bf16.mxu1 %v3492_v29 }
 0x4bd   : > { %v3596_v27 = vpop.eup %3595 }
 0x4be   : > { %v1476_v30 = vsel %vm1180_vm1, %v3596_v27, 0.0  ;;  %3347 = vmatpush3.bf16.msra.mxu1 %v3492_v29  ;;  %v3598_v32 = vpop.eup %3597 }
 0x4bf   : > { %1477 = vadd.xlane.f32.xlu1 %v1476_v30  ;;  %v1470_v35 = vsel %vm1180_vm1, %v3598_v32, 0.0  ;;  %3348 = vmatprep.subr.bf16.mxu1 %v3493_v37 }
 0x4c0   : > { %v3600_v33 = vpop.eup %3599 }
 0x4c1   : > { %v1479_v34 = vsel %vm1180_vm1, %v3600_v33, 0.0  ;;  %v3602_v31 = vpop.eup %3601 }
 0x4c2   : > { %1480 = vadd.xlane.f32.xlu0 %v1479_v34  ;;  %v1473_v36 = vsel %vm1180_vm1, %v3602_v31, 0.0  ;;  %3349 = vmatpush3.bf16.msra.mxu1 %v3493_v37  ;;  %v3499_v37 = vld [vmem:[%s4083_s6 + $0xe0] ss:$16 sps:$4 sm:$0xff]  }
 0x4c3   : > { %1471 = vadd.xlane.f32.xlu1 %v1470_v35  ;;  %3350 = vmatprep.subr.bf16.mxu1 %v3494_v38 }
 0x4c6   : > { %1474 = vadd.xlane.f32.xlu0 %v1473_v36  ;;  %3351 = vmatpush3.bf16.msra.mxu1 %v3494_v38  ;;  %v3501_v38 = vld [vmem:[%s4083_s6 + $0xe4] ss:$16 sps:$4 sm:$0xff]  }
 0x4d4   : > { %1496 = vrot.lane.b32.xlu1 %v4233_v54, %s3822_s20 }
 0x4dc   : > { %1494 = vrot.lane.b32.xlu0 %v4237_v57, %s3822_s20 }
 0x548   : > { %v1478_v39 = vpop.xlane.xlu1 %1477 }
 0x54b   : > { %v1481_v43 = vpop.xlane.xlu0 %1480 }
 0x54c   : > { %v1472_v40 = vpop.xlane.xlu1 %1471 }
 0x54f   : > { %v1475_v44 = vpop.xlane.xlu0 %1474 }
 0x550   : > { %v1497_v42 = vpop.permute.xlu1 %1496  ;;  %3603 = vrcp.f32 %v1475_v44 }
 0x551   : > { %3364 = vmatprep.subr.bf16.mxu1 %v1497_v42  ;;  %3605 = vrcp.f32 %v1472_v40  ;;  %v3504_v40 = vld [vmem:[%s4083_s6 + $0xec] ss:$16 sps:$4 sm:$0xff]  }
 0x552   : > { %3607 = vrcp.f32 %v1481_v43  ;;  %1980 = vmatprep.subr.bf16.mxu0 %v3504_v40  ;;  %v3138_v40 = vld [vmem:[%s4852_s1] ss:$0 sm:$0xff] }
 0x553   : > { %3609 = vrcp.f32 %v1478_v39  ;;  %v1495_v59 = vpop.permute.xlu0 %1494  ;;  %v3502_v39 = vld [vmem:[%s4083_s6 + $0xe8] ss:$16 sps:$4 sm:$0xff]  }
 0x55d   : > { %v3604_v46 = vpop.eup %3603 }
 0x55e   : > { %v3606_v48 = vpop.eup %3605  ;;  %v1487_v50 = vmul.f32 %v3604_v46, %v3602_v31 }
 0x55f   : > { %v1486_v54 = vmul.f32 %v3606_v48, %v3598_v32  ;;  %v3608_v56 = vpop.eup %3607 }
 0x560   : > { %v3610_v12 = vpop.eup %3609  ;;  %v1489_v61 = vmul.f32 %v3608_v56, %v3600_v33  ;;  %v3510_v56 = vld [vmem:[%s4083_s6 + $0xcc] ss:$16 sps:$4 sm:$0xff]  }
 0x561   : > { %v1490_v57 = vpack.c.bf16 %v1487_v50, %v1486_v54  ;;  %v1488_v62 = vmul.f32 %v3610_v12, %v3596_v27  ;;  %v3508_v12 = vld [vmem:[%s4083_s6 + $0xc8] ss:$16 sps:$4 sm:$0xff]  }
 0x563   : > { %v1491_v63 = vpack.c.bf16 %v1489_v61, %v1488_v62  ;;  %v3516_v61 = vld [vmem:[%s4083_s6 + $0xac] ss:$16 sps:$4 sm:$0xff]   ;;  %v3511_v62 = vld [vmem:[%s4083_s6 + $0xa0] ss:$16 sps:$4 sm:$0xff]  }
 0x579   : > { %v3342_v45 = vpop.f32.mrf.mxu1 }
 0x57b   : > { %v1267_v47 = vpop.f32.mrf.mxu1 }
 0x57d   : > { %v3343_v49 = vpop.f32.mrf.mxu1 }
 0x57e   : > { %v1283_v55 = vpack.c.bf16 %v3343_v49, %v3342_v45 }
 0x57f   : > { %v1270_v51 = vpop.f32.mrf.mxu1 }
 0x580   : > { %v1282_v53 = vpack.c.bf16 %v1270_v51, %v1267_v47 }
 0x582   : > { %3352 = vmatprep.mubr.msk.bf16.mxu1 %vm1118_vm0, %v1282_v53 }
 0x583   : > { %3353 = vmatmul.mubr.msk.bf16.vlgmr.msra.gmra.mxu1 %vm1118_vm0, %v1283_v55  ;;  %v3507_v55 = vld [vmem:[%s4083_s6 + $0xc4] ss:$16 sps:$4 sm:$0xff]  }
 0x584   : > { %3365 = vmatpush3.bf16.msra.mxu1 %v1497_v42  ;;  %3368 = vmatprep.mubr.msk.bf16.mxu1 %vm1180_vm1, %v1490_v57  ;;  %v3505_v57 = vld [vmem:[%s4083_s6 + $0xc0] ss:$16 sps:$4 sm:$0xff]  }
 0x585   : > { %3366 = vmatprep.subr.bf16.mxu1 %v1495_v59 }
 0x588   : > { %3367 = vmatpush3.bf16.msra.mxu1 %v1495_v59  ;;  %v3513_v59 = vld [vmem:[%s4083_s6 + $0xa4] ss:$16 sps:$4 sm:$0xff]  }
 0x589   : > { %1927 = vmatprep.subr.bf16.mxu1 %v3501_v38 }
 0x58b   : > { %3369 = vmatmul.mubr.msk.bf16.vlgmr.msra.gmra.mxu1 %vm1180_vm1, %v1491_v63  ;;  %v3514_v63 = vld [vmem:[%s4083_s6 + $0xa8] ss:$16 sps:$4 sm:$0xff]  }
 0x58c   : > { %1959 = vmatprep.mubr.bf16.mxu1 %v3821_v52  ;;  %1928 = vmatpush1.bf16.msra.mxu1 %v3499_v37 }
 0x58d   : > { %1929 = vmatprep.subr.bf16.mxu1 %v3507_v55 }
 0x590   : > { %1930 = vmatpush1.bf16.msra.mxu1 %v3505_v57  ;;  %v3548_v57 = vld [vmem:[%s4854_s0 + $0xf8] sm:$0xff]  }
 0x591   : > { %1931 = vmatprep.subr.bf16.mxu1 %v3513_v59  ;;  %v3550_v59 = vld [vmem:[%s4854_s0 + $0xb8] sm:$0xff]  }
 0x594   : > { %1932 = vmatpush1.bf16.msra.mxu1 %v3511_v62  ;;  %v3553_v62 = vld [vmem:[%s4854_s0 + $0x30] sm:$0xff]  }
 0x595   : > { %1933 = vmatprep.subr.bf16.mxu1 %v3519_v0  ;;  %v3555_v0 = vld [vmem:[%s4854_s0 + $0x68] sm:$0xff]  }
 0x598   : > { %1934 = vmatpush1.bf16.msra.mxu1 %v3517_v2  ;;  %v3557_v2 = vld [vmem:[%s4854_s0 + $0x28] sm:$0xff]  }
 0x643   : > { %v3354_v4 = vpop.f32.mrf.mxu1 }
 0x644   : > { %v1371_v24 = vadd.f32 %v3354_v4, %v3127_v19  ;;  %v3523_v4 = vld [vmem:[%s4083_s6 + $0x60] ss:$16 sps:$4 sm:$0xff]  }
 0x645   : > { %v1348_v5 = vpop.f32.mrf.mxu1 }
 0x646   : > { %v1369_v21 = vadd.f32 %v3127_v19, %v1348_v5  ;;  %v3525_v5 = vld [vmem:[%s4083_s6 + $0x64] ss:$16 sps:$4 sm:$0xff]  }
 0x647   : > { %v3355_v8 = vpop.f32.mrf.mxu1  ;;  %1935 = vmatprep.subr.bf16.mxu1 %v3525_v5  ;;  %v3560_v5 = vld [vmem:[%s4854_s0 + $0xe0] sm:$0xff]  }
 0x648   : > { %v1372_v32 = vadd.f32 %v3355_v8, %v3127_v19  ;;  %v3526_v8 = vld [vmem:[%s4083_s6 + $0x68] ss:$16 sps:$4 sm:$0xff]   ;;  %1936 = vmatpush1.bf16.msra.mxu1 %v3523_v4  ;;  %v3559_v4 = vld [vmem:[%s4854_s0 + $0x60] sm:$0xff]  }
 0x649   : > { %v1351_v9 = vpop.f32.mrf.mxu1 }
 0x64a   : > { %v1370_v28 = vadd.f32 %v3127_v19, %v1351_v9  ;;  %v3528_v9 = vld [vmem:[%s4083_s6 + $0x6c] ss:$16 sps:$4 sm:$0xff]   ;;  %v3535_v19 = vld [vmem:[%s4083_s6 + $0x20] ss:$16 sps:$4 sm:$0xff]  }
 0x64b   : > { %v3370_v13 = vpop.f32.mrf.mxu1 }
 0x64d   : > { %v1540_v14 = vpop.f32.mrf.mxu1 }
 0x64f   : > { %v3371_v15 = vpop.f32.mrf.mxu1 }
 0x650   : > { %v1556_v18 = vpack.c.bf16 %v3371_v15, %v3370_v13  ;;  %v3531_v13 = vld [vmem:[%s4083_s6 + $0x44] ss:$16 sps:$4 sm:$0xff]   ;;  %v3529_v15 = vld [vmem:[%s4083_s6 + $0x40] ss:$16 sps:$4 sm:$0xff]  }
 0x651   : > { %v1543_v16 = vpop.f32.mrf.mxu1  ;;  %1937 = vmatprep.subr.bf16.mxu1 %v3531_v13  ;;  %v3563_v13 = vld [vmem:[%s4854_s0 + $0x58] sm:$0xff]  }
 0x652   : > { %v1555_v17 = vpack.c.bf16 %v1543_v16, %v1540_v14  ;;  %v3534_v14 = vld [vmem:[%s4083_s6 + $0x4c] ss:$16 sps:$4 sm:$0xff]   ;;  %v3532_v16 = vld [vmem:[%s4083_s6 + $0x48] ss:$16 sps:$4 sm:$0xff]   ;;  %1938 = vmatpush1.bf16.msra.mxu1 %v3529_v15 }
 0x653   : > { %v3565_v15 = vld [vmem:[%s4854_s0 + $0x18] sm:$0xff]  }
 0x654   : > { %3380 = vmatprep.mubr.msk.bf16.mxu0 %vm1118_vm0, %v1555_v17  ;;  %v3537_v17 = vld [vmem:[%s4083_s6 + $0x24] ss:$16 sps:$4 sm:$0xff]  }
 0x655   : > { %3381 = vmatmul.mubr.msk.bf16.vlgmr.msra.gmra.mxu0 %vm1118_vm0, %v1556_v18  ;;  %v3540_v18 = vld [vmem:[%s4083_s6 + $0x2c] ss:$16 sps:$4 sm:$0xff]   ;;  %1939 = vmatprep.subr.bf16.mxu1 %v3537_v17  ;;  %v3567_v17 = vld [vmem:[%s4854_s0 + $0x50] sm:$0xff]  }
 0x656   : > { %2012 = vmatprep.mubr.bf16.mxu0 %v3821_v52  ;;  %1981 = vmatpush1.bf16.msra.mxu0 %v3502_v39 }
 0x657   : > { %1982 = vmatprep.subr.bf16.mxu0 %v3510_v56  ;;  %1940 = vmatpush1.bf16.msra.mxu1 %v3535_v19  ;;  %v3547_v56 = vld [vmem:[%s4854_s0 + $0x78] sm:$0xff]   ;;  %v3569_v19 = vld [vmem:[%s4854_s0 + $0x10] sm:$0xff]  }
 0x65a   : > { %1983 = vmatpush1.bf16.msra.mxu0 %v3508_v12  ;;  %v3549_v12 = vld [vmem:[%s4854_s0 + $0x38] sm:$0xff]  }
 0x65b   : > { %1984 = vmatprep.subr.bf16.mxu0 %v3516_v61  ;;  %v3552_v61 = vld [vmem:[%s4854_s0 + $0xf0] sm:$0xff]  }
 0x65e   : > { %1985 = vmatpush1.bf16.msra.mxu0 %v3514_v63  ;;  %v3554_v63 = vld [vmem:[%s4854_s0 + $0xb0] sm:$0xff]  }
 0x65f   : > { %1986 = vmatprep.subr.bf16.mxu0 %v3522_v1  ;;  %v3556_v1 = vld [vmem:[%s4854_s0 + $0xe8] sm:$0xff]  }
 0x662   : > { %1987 = vmatpush1.bf16.msra.mxu0 %v3520_v3  ;;  %v3558_v3 = vld [vmem:[%s4854_s0 + $0xa8] sm:$0xff]  }
 0x663   : > { %1988 = vmatprep.subr.bf16.mxu0 %v3528_v9  ;;  %v3562_v9 = vld [vmem:[%s4854_s0 + $0xa0] sm:$0xff]  }
 0x666   : > { %1989 = vmatpush1.bf16.msra.mxu0 %v3526_v8  ;;  %v3561_v8 = vld [vmem:[%s4854_s0 + $0x20] sm:$0xff]  }
 0x667   : > { %1990 = vmatprep.subr.bf16.mxu0 %v3534_v14  ;;  %v3564_v14 = vld [vmem:[%s4854_s0 + $0xd8] sm:$0xff]  }
 0x66a   : > { %1991 = vmatpush1.bf16.msra.mxu0 %v3532_v16  ;;  %v3566_v16 = vld [vmem:[%s4854_s0 + $0x98] sm:$0xff]  }
 0x66b   : > { %1992 = vmatprep.subr.bf16.mxu0 %v3540_v18  ;;  %v3568_v18 = vld [vmem:[%s4854_s0 + $0xd0] sm:$0xff]  }
 0x715   : > { %v3382_v20 = vpop.f32.mrf.mxu0 }
 0x716   : > { %v1638_v29 = vadd.f32 %v3382_v20, %v1371_v24  ;;  %v3538_v20 = vld [vmem:[%s4083_s6 + $0x28] ss:$16 sps:$4 sm:$0xff]   ;;  %v3541_v24 = vld [vmem:[%s4083_s6] ss:$16 sps:$4 sm:$0xff]  }
 0x717   : > { %v1621_v23 = vpop.f32.mrf.mxu0  ;;  %1993 = vmatpush1.bf16.msra.mxu0 %v3538_v20  ;;  %v3570_v20 = vld [vmem:[%s4854_s0 + $0x90] sm:$0xff]  }
 0x718   : > { %v1636_v25 = vadd.f32 %v1621_v23, %v1369_v21  ;;  %v1642_v31 = vadd.f32 %v1638_v29, %v4145_v6  ;;  %v3543_v21 = vld [vmem:[%s4083_s6 + $0x4] ss:$16 sps:$4 sm:$0xff]   ;;  %v3546_v23 = vld [vmem:[%s4083_s6 + $0xc] ss:$16 sps:$4 sm:$0xff]  }
 0x719   : > { %v3383_v26 = vpop.f32.mrf.mxu0  ;;  %1941 = vmatprep.subr.bf16.mxu1 %v3543_v21  ;;  %1994 = vmatprep.subr.bf16.mxu0 %v3546_v23  ;;  %v3571_v21 = vld [vmem:[%s4854_s0 + $0x48] sm:$0xff]  }
 0x71a   : > { %v1640_v27 = vadd.f32 %v1636_v25, %v4130_v58  ;;  %v1639_v34 = vadd.f32 %v3383_v26, %v1372_v32  ;;  %v3544_v25 = vld [vmem:[%s4083_s6 + $0x8] ss:$16 sps:$4 sm:$0xff]   ;;  %1942 = vmatpush1.bf16.msra.mxu1 %v3541_v24 }
 0x71b   : > { %v1624_v30 = vpop.f32.mrf.mxu0  ;;  %1995 = vmatpush1.bf16.msra.mxu0 %v3544_v25  ;;  %3252 = vmatprep.subr.bf16.mxu1 %v3547_v56  ;;  %v3572_v23 = vld [vmem:[%s4854_s0 + $0xc8] sm:$0xff]  }
 0x71c   : > { %v1637_v33 = vadd.f32 %v1624_v30, %v1370_v28  ;;  %1646 = vadd.xlane.f32.xlu1 %v1640_v27  ;;  %v1643_v36 = vadd.f32 %v1639_v34, %v4147_v7  ;;  %3280 = vmatprep.subr.bf16.mxu0 %v3548_v57  ;;  %v3573_v24 = vld [vmem:[%s4854_s0 + $0x8] sm:$0xff]  }
 0x71d   : > { %v3574_v25 = vld [vmem:[%s4854_s0 + $0x88] sm:$0xff]  }
 0x71e   : > { %v1641_v35 = vadd.f32 %v1637_v33, %v4133_v60 }
 0x720   : > { %1650 = vadd.xlane.f32.xlu1 %v1642_v31  ;;  %1648 = vadd.xlane.f32.xlu0 %v1641_v35 }
 0x724   : > { %1652 = vadd.xlane.f32.xlu0 %v1643_v36 }
 0x7a5   : > { %v1647_v58 = vpop.xlane.xlu1 %1646 }
 0x7a6   : > { %v1655_v42 = vmul.f32 0.0078125, %v1647_v58 }
 0x7a8   : > { %v4284_v43 = vsub.f32 %v1640_v27, %v1655_v42 }
 0x7a9   : > { %v1651_v6 = vpop.xlane.xlu1 %1650  ;;  %v1649_v44 = vpop.xlane.xlu0 %1648 }
 0x7aa   : > { %v1657_v60 = vmul.f32 0.0078125, %v1651_v6  ;;  %v1656_v45 = vmul.f32 0.0078125, %v1649_v44  ;;  %v1663_v7 = vmul.f32 %v4284_v43, %v4284_v43 }
 0x7ac   : > { %v4288_v46 = vsub.f32 %v1642_v31, %v1657_v60  ;;  %v4290_v47 = vsub.f32 %v1641_v35, %v1656_v45  ;;  %1667 = vadd.xlane.f32.xlu1 %v1663_v7  ;;  %v3139_v60 = vld [vmem:[%s4853_s21] ss:$0 sm:$0xff] }
 0x7ad   : > { %v1653_v48 = vpop.xlane.xlu0 %1652 }
 0x7ae   : > { %v1658_v49 = vmul.f32 0.0078125, %v1653_v48  ;;  %v1665_v50 = vmul.f32 %v4288_v46, %v4288_v46  ;;  %v1664_v51 = vmul.f32 %v4290_v47, %v4290_v47 }
 0x7b0   : > { %v4296_v53 = vsub.f32 %v1643_v36, %v1658_v49  ;;  %1671 = vadd.xlane.f32.xlu1 %v1665_v50  ;;  %1669 = vadd.xlane.f32.xlu0 %v1664_v51 }
 0x7b2   : > { %v1666_v54 = vmul.f32 %v4296_v53, %v4296_v53 }
 0x7b4   : > { %1673 = vadd.xlane.f32.xlu0 %v1666_v54 }
 0x835   : > { %v1668_v26 = vpop.xlane.xlu1 %1667 }
 0x836   : > { %v1675_v28 = vmul.f32 0.0078125, %v1668_v26  ;;  %v1745_v26 = vld [vmem:[%s4089_s17] sm:$0xf] }
 0x838   : > { %v1679_v29 = vadd.f32 1e-12, %v1675_v28  ;;  %v1761_v28 = vsub.s32 3, %v4155_v10 }
 0x839   : > { %v1672_v27 = vpop.xlane.xlu1 %1671  ;;  %v1670_v30 = vpop.xlane.xlu0 %1669 }
 0x83a   : > { %3611 = vrsqrt.f32 %v1679_v29  ;;  %v1677_v32 = vmul.f32 0.0078125, %v1672_v27  ;;  %v1676_v33 = vmul.f32 0.0078125, %v1670_v30  ;;  %v3575_v29 = vld [vmem:[%s4854_s0 + $0x40] sm:$0xff]   ;;  %v4390_v30 = vrot.slane %v1745_v26, %v848_v11 }
 0x83b   : > { %v3576_v27 = vld [vmem:[%s4854_s0 + $0xc0] sm:$0xff]  }
 0x83c   : > { %v1680_v34 = vadd.f32 1e-12, %v1676_v33  ;;  %v1681_v31 = vadd.f32 1e-12, %v1677_v32  ;;  %v4394_v32 = vrot.slane %v1745_v26, %v856_v41  ;;  %v3577_v33 = vld [vmem:[%s4854_s0] sm:$0xff]  }
 0x83d   : > { %v1674_v35 = vpop.xlane.xlu0 %1673 }
 0x83e   : > { %v1678_v36 = vmul.f32 0.0078125, %v1674_v35  ;;  %3613 = vrsqrt.f32 %v1680_v34  ;;  %v3578_v34 = vld [vmem:[%s4854_s0 + $0x80] sm:$0xff]  }
 0x83f   : > { %3615 = vrsqrt.f32 %v1681_v31 }
 0x840   : > { %v1682_v37 = vadd.f32 1e-12, %v1678_v36  ;;  %v4400_v36 = vrot.slane %v1745_v26, %v852_v22 }
 0x842   : > { %3617 = vrsqrt.f32 %v1682_v37  ;;  %v4402_v37 = vrot.slane %v1745_v26, %v1761_v28 }
 0x847   : > { %v3612_v38 = vpop.eup %3611 }
 0x848   : > { %v1687_v39 = vmul.f32 %v3612_v38, %v4284_v43 }
 0x84a   : > { %v1697_v6 = vmul.f32 %v3138_v40, %v1687_v39 }
 0x84b   : > { %v3614_v58 = vpop.eup %3613 }
 0x84c   : > { %v1688_v42 = vmul.f32 %v3614_v58, %v4290_v47  ;;  %v3616_v44 = vpop.eup %3615  ;;  %v4341_v43 = vadd.f32 %v3139_v60, %v1697_v6 }
 0x84d   : > { %v1689_v47 = vmul.f32 %v3616_v44, %v4288_v46 }
 0x84e   : > { %v1698_v7 = vmul.f32 %v3138_v40, %v1688_v42 }
 0x84f   : > { %v3618_v45 = vpop.eup %3617  ;;  %v1699_v54 = vmul.f32 %v3138_v40, %v1689_v47 }
 0x850   : > { %v1690_v48 = vmul.f32 %v3618_v45, %v4296_v53  ;;  %v4343_v49 = vadd.f32 %v3139_v60, %v1698_v7 }
 0x851   : > { %v4352_v55 = vadd.f32 %v3139_v60, %v1699_v54 }
 0x852   : > { %v1711_v50 = vpack.c.bf16 %v4343_v49, %v4341_v43  ;;  %v1700_v51 = vmul.f32 %v3138_v40, %v1690_v48 }
 0x853   : > { %4856 = vst [vmem:[#allocation17_spill] sm:$0xff] %v4352_v55 }
 0x854   : > { %1960 = vmatmul.mubr.bf16.vlgmr.msra.gmra.mxu1 %v1711_v50  ;;  %2013 = vmatmul.mubr.bf16.vlgmr.msra.gmra.mxu0 %v1711_v50  ;;  %v4350_v53 = vadd.f32 %v3139_v60, %v1700_v51 }
 0x855   : > { %1969 = vmatprep.mubr.bf16.mxu1 %v3821_v52  ;;  %2022 = vmatprep.mubr.bf16.mxu0 %v3821_v52  ;;  %v3551_v52 = vld [vmem:[%s4854_s0 + $0x70] sm:$0xff]  }
 0x856   : > { %4855 = vst [vmem:[#allocation16_spill] sm:$0xff] %v4350_v53  ;;  %v1712_v46 = vpack.c.bf16 %v4350_v53, %v4352_v55  ;;  %3253 = vmatpush3.bf16.msra.mxu1 %v3549_v12  ;;  %3281 = vmatpush3.bf16.msra.mxu0 %v3550_v59 }
 0x857   : > { %3254 = vmatprep.subr.bf16.mxu1 %v3551_v52  ;;  %3282 = vmatprep.subr.bf16.mxu0 %v3552_v61 }
 0x85a   : > { %3255 = vmatpush3.bf16.msra.mxu1 %v3553_v62  ;;  %3283 = vmatpush3.bf16.msra.mxu0 %v3554_v63 }
 0x85b   : > { %3256 = vmatprep.subr.bf16.mxu1 %v3555_v0  ;;  %3284 = vmatprep.subr.bf16.mxu0 %v3556_v1 }
 0x85c   : > { %1970 = vmatmul.mubr.bf16.gmra.mxu1 %v1712_v46  ;;  %2023 = vmatmul.mubr.bf16.gmra.mxu0 %v1712_v46 }
 0x85e   : > { %3257 = vmatpush3.bf16.msra.mxu1 %v3557_v2  ;;  %3285 = vmatpush3.bf16.msra.mxu0 %v3558_v3 }
 0x85f   : > { %3258 = vmatprep.subr.bf16.mxu1 %v3559_v4  ;;  %3286 = vmatprep.subr.bf16.mxu0 %v3560_v5 }
 0x862   : > { %3259 = vmatpush3.bf16.msra.mxu1 %v3561_v8  ;;  %3287 = vmatpush3.bf16.msra.mxu0 %v3562_v9 }
 0x863   : > { %3260 = vmatprep.subr.bf16.mxu1 %v3563_v13  ;;  %3288 = vmatprep.subr.bf16.mxu0 %v3564_v14 }
 0x866   : > { %3261 = vmatpush3.bf16.msra.mxu1 %v3565_v15  ;;  %3289 = vmatpush3.bf16.msra.mxu0 %v3566_v16 }
 0x867   : > { %3262 = vmatprep.subr.bf16.mxu1 %v3567_v17  ;;  %3290 = vmatprep.subr.bf16.mxu0 %v3568_v18 }
 0x86a   : > { %3263 = vmatpush3.bf16.msra.mxu1 %v3569_v19  ;;  %3291 = vmatpush3.bf16.msra.mxu0 %v3570_v20 }
 0x86b   : > { %3264 = vmatprep.subr.bf16.mxu1 %v3571_v21  ;;  %3292 = vmatprep.subr.bf16.mxu0 %v3572_v23 }
 0x86e   : > { %3265 = vmatpush3.bf16.msra.mxu1 %v3573_v24  ;;  %3293 = vmatpush3.bf16.msra.mxu0 %v3574_v25 }
 0x86f   : > { %3266 = vmatprep.subr.bf16.mxu1 %v3575_v29  ;;  %3294 = vmatprep.subr.bf16.mxu0 %v3576_v27 }
 0x872   : > { %3267 = vmatpush3.bf16.msra.mxu1 %v3577_v33  ;;  %3295 = vmatpush3.bf16.msra.mxu0 %v3578_v34 }
 0x914   : > { %v1961_v31 = vpop.f32.mrf.mxu1  ;;  %v2014_v35 = vpop.f32.mrf.mxu0 }
 0x915   : > { %v4405_v11 = vadd.f32 %v1961_v31, %v4390_v30  ;;  %v4408_v41 = vadd.f32 %v2014_v35, %v4394_v32 }
 0x916   : > { %v1963_v38 = vpop.f32.mrf.mxu1  ;;  %v2016_v39 = vpop.f32.mrf.mxu0 }
 0x917   : > { %v4411_v40 = vmul.f32 0.70710677, %v4405_v11  ;;  %v4414_v58 = vmul.f32 0.70710677, %v4408_v41  ;;  %v4417_v10 = vadd.f32 %v1963_v38, %v4400_v36  ;;  %v4420_v22 = vadd.f32 %v2016_v39, %v4402_v37 }
 0x918   : > { %v1965_v48 = vpop.f32.mrf.mxu1  ;;  %v2018_v12 = vpop.f32.mrf.mxu0 }
 0x919   : > { %v2065_v42 = vand.u32 2147483647, %v4411_v40  ;;  %v2067_v6 = vand.u32 2147483647, %v4414_v58  ;;  %v4425_v44 = vmul.f32 0.70710677, %v4417_v10  ;;  %v4433_v57 = vadd.f32 %v1965_v48, %v4390_v30 }
 0x91a   : > { %v4428_v60 = vmul.f32 0.70710677, %v4420_v22  ;;  %v1967_v59 = vpop.f32.mrf.mxu1  ;;  %v4439_v63 = vadd.f32 %v2018_v12, %v4394_v32  ;;  %v2020_v2 = vpop.f32.mrf.mxu0  ;;  %vm2369_vm2 = vcmp.ge.f32.partialorder %v4411_v40, 0.0  ;;  %vm2371_vm3 = vcmp.ge.f32.partialorder %v4414_v58, 0.0 }
 0x91b   : > { %v2081_v45 = vmul.f32 0.3275911, %v2065_v42  ;;  %v2083_v7 = vmul.f32 0.3275911, %v2067_v6  ;;  %v2066_v47 = vand.u32 2147483647, %v4425_v44  ;;  %v4442_v0 = vadd.f32 %v1967_v59, %v4400_v36 }
 0x91c   : > { %v2068_v50 = vand.u32 2147483647, %v4428_v60  ;;  %v4436_v62 = vmul.f32 0.70710677, %v4433_v57  ;;  %v4446_v3 = vmul.f32 0.70710677, %v4439_v63  ;;  %v4455_v9 = vadd.f32 %v2020_v2, %v4402_v37 }
 0x91d   : > { %v2097_v51 = vadd.f32 1.0, %v2081_v45  ;;  %v2099_v54 = vadd.f32 1.0, %v2083_v7  ;;  %v2082_v46 = vmul.f32 0.3275911, %v2066_v47  ;;  %v4449_v5 = vmul.f32 0.70710677, %v4442_v0 }
 0x91e   : > { %v2084_v56 = vmul.f32 0.3275911, %v2068_v50  ;;  %v2069_v1 = vand.u32 2147483647, %v4436_v62  ;;  %v4452_v8 = vand.u32 2147483647, %v4446_v3 }
 0x91f   : > { %3619 = vrcp.f32 %v2097_v51  ;;  %v2098_v52 = vadd.f32 1.0, %v2082_v46  ;;  %v4458_v14 = vand.u32 2147483647, %v4449_v5  ;;  %v4462_v16 = vmul.f32 0.70710677, %v4455_v9 }
 0x920   : > { %3621 = vrcp.f32 %v2099_v54  ;;  %v2100_v61 = vadd.f32 1.0, %v2084_v56  ;;  %v2085_v4 = vmul.f32 0.3275911, %v2069_v1  ;;  %v2087_v15 = vmul.f32 0.3275911, %v4452_v8 }
 0x921   : > { %3623 = vrcp.f32 %v2098_v52  ;;  %v2273_v17 = vsub.f32 0.0, %v2065_v42  ;;  %v2086_v18 = vmul.f32 0.3275911, %v4458_v14  ;;  %v2275_v19 = vsub.f32 0.0, %v2067_v6 }
 0x922   : > { %3625 = vrcp.f32 %v2100_v61  ;;  %v2101_v13 = vadd.f32 1.0, %v2085_v4  ;;  %v2103_v20 = vadd.f32 1.0, %v2087_v15  ;;  %v4466_v21 = vand.u32 2147483647, %v4462_v16 }
 0x923   : > { %v2102_v23 = vadd.f32 1.0, %v2086_v18  ;;  %v2274_v25 = vsub.f32 0.0, %v2066_v47  ;;  %v2289_v27 = vmul.f32 %v2273_v17, %v2065_v42  ;;  %v2291_v34 = vmul.f32 %v2275_v19, %v2067_v6  ;;  %v2024_v19 = vpop.f32.mrf.mxu0 }
 0x924   : > { %3627 = vrcp.f32 %v2101_v13  ;;  %v2088_v26 = vmul.f32 0.3275911, %v4466_v21  ;;  %v2276_v31 = vsub.f32 0.0, %v2068_v50  ;;  %v2277_v52 = vsub.f32 0.0, %v2069_v1  ;;  %v1971_v13 = vpop.f32.mrf.mxu1 }
 0x925   : > { %3629 = vrcp.f32 %v2103_v20  ;;  %v2290_v7 = vmul.f32 %v2274_v25, %v2066_v47  ;;  %v2305_v51 = vmul.f32 1.442695, %v2289_v27  ;;  %v2309_v56 = vmul.f32 1.442695, %v2291_v34 }
 0x926   : > { %3631 = vrcp.f32 %v2102_v23  ;;  %v2104_v35 = vadd.f32 1.0, %v2088_v26  ;;  %v2292_v12 = vmul.f32 %v2276_v31, %v2068_v50  ;;  %v2293_v25 = vmul.f32 %v2277_v52, %v2069_v1 }
 0x927   : > { %v2307_v61 = vmul.f32 1.442695, %v2290_v7  ;;  %v2278_v26 = vsub.f32 0.0, %v4458_v14  ;;  %v2280_v31 = vsub.f32 0.0, %v4466_v21  ;;  %v2279_v7 = vsub.f32 0.0, %v4452_v8 }
 0x928   : > { %3633 = vrcp.f32 %v2104_v35  ;;  %v2311_v18 = vmul.f32 1.442695, %v2292_v12  ;;  %v4497_v35 = vadd.f32 %v2024_v19, %v4394_v32  ;;  %vm2370_vm4 = vcmp.ge.f32.partialorder %v4425_v44, 0.0 }
 0x929   : > { %3635 = vpow2.f32 %v2305_v51  ;;  %vm2372_vm5 = vcmp.ge.f32.partialorder %v4428_v60, 0.0  ;;  %vm2373_vm6 = vcmp.ge.f32.partialorder %v4436_v62, 0.0  ;;  %vm2374_vm7 = vcmp.ge.f32.partialorder %v4449_v5, 0.0 }
 0x92a   : > { %3637 = vpow2.f32 %v2309_v56  ;;  %vm2375_vm8 = vcmp.ge.f32.partialorder %v4446_v3, 0.0  ;;  %vm2376_vm9 = vcmp.ge.f32.partialorder %v4462_v16, 0.0 }
 0x92b   : > { %3639 = vpow2.f32 %v2307_v61 }
 0x92c   : > { %v4468_v24 = vpop.eup %3619  ;;  %3641 = vpow2.f32 %v2311_v18 }
 0x92d   : > { %v4471_v28 = vpop.eup %3621  ;;  %v2129_v29 = vmul.f32 1.0614054, %v4468_v24 }
 0x92e   : > { %v2131_v33 = vmul.f32 1.0614054, %v4471_v28  ;;  %v4475_v39 = vpop.eup %3623 }
 0x92f   : > { %v2145_v38 = vadd.f32 -1.4531521, %v2129_v29  ;;  %v2130_v54 = vmul.f32 1.0614054, %v4475_v39  ;;  %v4479_v46 = vpop.eup %3625  ;;  %v4490_v29 = vadd.f32 %v1971_v13, %v4390_v30 }
 0x930   : > { %v2147_v45 = vadd.f32 -1.4531521, %v2131_v33  ;;  %v2132_v59 = vmul.f32 1.0614054, %v4479_v46 }
 0x931   : > { %v2161_v48 = vmul.f32 %v4468_v24, %v2145_v38  ;;  %v2146_v6 = vadd.f32 -1.4531521, %v2130_v54  ;;  %v4484_v15 = vpop.eup %3627 }
 0x932   : > { %v2163_v42 = vmul.f32 %v4471_v28, %v2147_v45  ;;  %v2148_v4 = vadd.f32 -1.4531521, %v2132_v59  ;;  %v2133_v23 = vmul.f32 1.0614054, %v4484_v15  ;;  %v4492_v27 = vpop.eup %3629  ;;  %v4509_v59 = vmul.f32 0.70710677, %v4490_v29 }
 0x933   : > { %v2177_v2 = vadd.f32 1.4214138, %v2161_v48  ;;  %v2162_v47 = vmul.f32 %v4475_v39, %v2146_v6  ;;  %v4499_v38 = vpop.eup %3631  ;;  %v2135_v45 = vmul.f32 1.0614054, %v4492_v27  ;;  %v2294_v6 = vmul.f32 %v2278_v26, %v4458_v14 }
 0x934   : > { %v2179_v17 = vadd.f32 1.4214138, %v2163_v42  ;;  %v2164_v50 = vmul.f32 %v4479_v46, %v2148_v4  ;;  %v2149_v34 = vadd.f32 -1.4531521, %v2133_v23  ;;  %v2313_v42 = vmul.f32 1.442695, %v2293_v25 }
 0x935   : > { %v2178_v20 = vadd.f32 1.4214138, %v2162_v47  ;;  %v2193_v33 = vmul.f32 %v4468_v24, %v2177_v2  ;;  %v2151_v56 = vadd.f32 -1.4531521, %v2135_v45  ;;  %v2134_v12 = vmul.f32 1.0614054, %v4499_v38  ;;  %v4511_v52 = vpop.eup %3633 }
 0x936   : > { %v2195_v1 = vmul.f32 %v4471_v28, %v2179_v17  ;;  %v2180_v51 = vadd.f32 1.4214138, %v2164_v50  ;;  %v2165_v54 = vmul.f32 %v4484_v15, %v2149_v34  ;;  %v2296_v47 = vmul.f32 %v2280_v31, %v4466_v21 }
 0x937   : > { %v2194_v48 = vmul.f32 %v4475_v39, %v2178_v20  ;;  %v2209_v61 = vadd.f32 -0.28449672, %v2193_v33  ;;  %v4515_v4 = vmul.f32 0.70710677, %v4497_v35  ;;  %v2167_v17 = vmul.f32 %v4492_v27, %v2151_v56 }
 0x938   : > { %v2181_v2 = vadd.f32 1.4214138, %v2165_v54  ;;  %v2211_v13 = vadd.f32 -0.28449672, %v2195_v1  ;;  %v2150_v18 = vadd.f32 -1.4531521, %v2134_v12  ;;  %v2196_v14 = vmul.f32 %v4479_v46, %v2180_v51 }
 0x939   : > { %v2136_v19 = vmul.f32 1.0614054, %v4511_v52  ;;  %v2210_v20 = vadd.f32 -0.28449672, %v2194_v48  ;;  %v2295_v23 = vmul.f32 %v2279_v7, %v4452_v8  ;;  %v2183_v25 = vadd.f32 1.4214138, %v2167_v17  ;;  %v3636_v48 = vpop.eup %3635 }
 0x93a   : > { %v2197_v50 = vmul.f32 %v4484_v15, %v2181_v2  ;;  %v2166_v26 = vmul.f32 %v4499_v38, %v2150_v18  ;;  %v2315_v21 = vmul.f32 1.442695, %v2294_v6  ;;  %v2225_v34 = vmul.f32 %v4468_v24, %v2209_v61  ;;  %v3638_v56 = vpop.eup %3637 }
 0x93b   : > { %v2152_v33 = vadd.f32 -1.4531521, %v2136_v19  ;;  %v2319_v31 = vmul.f32 1.442695, %v2296_v47  ;;  %v4525_v1 = vand.u32 2147483647, %v4509_v59  ;;  %v2227_v51 = vmul.f32 %v4471_v28, %v2211_v13  ;;  %v3640_v18 = vpop.eup %3639 }
 0x93c   : > { %v4528_v45 = vand.u32 2147483647, %v4515_v4  ;;  %v2199_v54 = vmul.f32 %v4492_v27, %v2183_v25  ;;  %v2182_v8 = vadd.f32 1.4214138, %v2166_v26  ;;  %v2226_v12 = vmul.f32 %v4475_v39, %v2210_v20  ;;  %v3642_v55 = vpop.eup %3641 }
 0x93d   : > { %v2168_v7 = vmul.f32 %v4511_v52, %v2152_v33  ;;  %v2212_v6 = vadd.f32 -0.28449672, %v2196_v14  ;;  %v2213_v61 = vadd.f32 -0.28449672, %v2197_v50  ;;  %v2317_v2 = vmul.f32 1.442695, %v2295_v23 }
 0x93e   : > { %3643 = vpow2.f32 %v2313_v42  ;;  %v2198_v47 = vmul.f32 %v4499_v38, %v2182_v8  ;;  %v2241_v19 = vadd.f32 0.2548296, %v2225_v34  ;;  %v2215_v53 = vadd.f32 -0.28449672, %v2199_v54  ;;  %v1973_v54 = vpop.f32.mrf.mxu1 }
 0x93f   : > { %v2184_v17 = vadd.f32 1.4214138, %v2168_v7  ;;  %3645 = vpow2.f32 %v2315_v21  ;;  %v2089_v13 = vmul.f32 0.3275911, %v4525_v1  ;;  %v2243_v25 = vadd.f32 0.2548296, %v2227_v51 }
 0x940   : > { %v2214_v26 = vadd.f32 -0.28449672, %v2198_v47  ;;  %3647 = vpow2.f32 %v2319_v31  ;;  %v2091_v33 = vmul.f32 0.3275911, %v4528_v45  ;;  %v2242_v20 = vadd.f32 0.2548296, %v2226_v12 }
 0x941   : > { %v2228_v14 = vmul.f32 %v4479_v46, %v2212_v6  ;;  %v2229_v42 = vmul.f32 %v4484_v15, %v2213_v61  ;;  %3649 = vpow2.f32 %v2317_v2  ;;  %v2200_v23 = vmul.f32 %v4511_v52, %v2184_v17 }
 0x942   : > { %v2230_v50 = vmul.f32 %v4499_v38, %v2214_v26  ;;  %v2257_v21 = vmul.f32 %v4468_v24, %v2241_v19  ;;  %v2231_v34 = vmul.f32 %v4492_v27, %v2215_v53  ;;  %v2105_v51 = vadd.f32 1.0, %v2089_v13 }
 0x943   : > { %v2259_v31 = vmul.f32 %v4471_v28, %v2243_v25  ;;  %v2216_v8 = vadd.f32 -0.28449672, %v2200_v23  ;;  %v2107_v7 = vadd.f32 1.0, %v2091_v33  ;;  %v2258_v12 = vmul.f32 %v4475_v39, %v2242_v20 }
 0x944   : > { %v2244_v6 = vadd.f32 0.2548296, %v2228_v14  ;;  %v2245_v47 = vadd.f32 0.2548296, %v2229_v42  ;;  %v2246_v61 = vadd.f32 0.2548296, %v2230_v50  ;;  %v4546_v2 = vadd.f32 %v1973_v54, %v4400_v36 }
 0x945   : > { %v2337_v26 = vmul.f32 %v3636_v48, %v2257_v21  ;;  %v2247_v17 = vadd.f32 0.2548296, %v2231_v34  ;;  %v2232_v24 = vmul.f32 %v4511_v52, %v2216_v8  ;;  %3651 = vrcp.f32 %v2105_v51 }
 0x946   : > { %v2339_v53 = vmul.f32 %v3638_v56, %v2259_v31  ;;  %3653 = vrcp.f32 %v2107_v7  ;;  %v2338_v19 = vmul.f32 %v3640_v18, %v2258_v12  ;;  %v2260_v28 = vmul.f32 %v4479_v46, %v2244_v6 }
 0x947   : > { %v2261_v13 = vmul.f32 %v4484_v15, %v2245_v47  ;;  %v2248_v25 = vadd.f32 0.2548296, %v2232_v24  ;;  %v4552_v39 = vmul.f32 0.5, %v4405_v11  ;;  %v4555_v33 = vmul.f32 0.5, %v4408_v41  ;;  %v2026_v41 = vpop.f32.mrf.mxu0  ;;  %v1975_v47 = vpop.f32.mrf.mxu1 }
 0x948   : > { %v2262_v48 = vmul.f32 %v4499_v38, %v2246_v61  ;;  %v2353_v14 = vsub.f32 1.0, %v2337_v26  ;;  %v2263_v42 = vmul.f32 %v4492_v27, %v2247_v17  ;;  %v4561_v18 = vmul.f32 0.70710677, %v4546_v2 }
 0x949   : > { %v2264_v56 = vmul.f32 %v4511_v52, %v2248_v25  ;;  %v2355_v15 = vsub.f32 1.0, %v2339_v53  ;;  %v4566_v11 = vmul.f32 0.5, %v4417_v10  ;;  %v2354_v50 = vsub.f32 1.0, %v2338_v19 }
 0x94a   : > { %v4569_v23 = vmul.f32 0.5, %v4420_v22  ;;  %v2340_v27 = vmul.f32 %v3642_v55, %v2260_v28  ;;  %v4573_v54 = vand.u32 2147483647, %v4561_v18  ;;  %v2385_v31 = vsub.f32 0.0, %v2353_v14 }
 0x94b   : > { %v3644_v20 = vpop.eup %3643  ;;  %v4576_v10 = vmul.f32 0.5, %v4433_v57  ;;  %v4579_v7 = vadd.f32 %v2026_v41, %v4402_v37  ;;  %v2387_v22 = vsub.f32 0.0, %v2355_v15  ;;  %v4584_v55 = vmul.f32 0.5, %v4439_v63 }
 0x94c   : > { %v3646_v46 = vpop.eup %3645  ;;  %v2341_v52 = vmul.f32 %v3644_v20, %v2261_v13  ;;  %v4587_v12 = vmul.f32 0.5, %v4442_v0  ;;  %v2090_v6 = vmul.f32 0.3275911, %v4573_v54  ;;  %v2386_v57 = vsub.f32 0.0, %v2354_v50  ;;  %v2028_v20 = vpop.f32.mrf.mxu0 }
 0x94d   : > { %v3648_v38 = vpop.eup %3647  ;;  %v2342_v34 = vmul.f32 %v3646_v46, %v2262_v48  ;;  %v2356_v61 = vsub.f32 1.0, %v2340_v27  ;;  %v4593_v24 = vmul.f32 0.5, %v4455_v9  ;;  %v2401_v0 = vsel %vm2369_vm2, %v2353_v14, %v2385_v31  ;;  %v1977_v46 = vpop.f32.mrf.mxu1 }
 0x94e   : > { %v3650_v21 = vpop.eup %3649  ;;  %v2344_v51 = vmul.f32 %v3648_v38, %v2264_v56  ;;  %v2357_v26 = vsub.f32 1.0, %v2341_v52  ;;  %v2106_v63 = vadd.f32 1.0, %v2090_v6  ;;  %v4598_v28 = vmul.f32 0.70710677, %v4579_v7 }
 0x94f   : > { %v2343_v8 = vmul.f32 %v3650_v21, %v2263_v42  ;;  %v2358_v17 = vsub.f32 1.0, %v2342_v34  ;;  %v4601_v13 = vadd.f32 %v1975_v47, %v4390_v30  ;;  %v2403_v48 = vsel %vm2371_vm3, %v2355_v15, %v2387_v22 }
 0x950   : > { %v2360_v53 = vsub.f32 1.0, %v2344_v51  ;;  %v2281_v9 = vsub.f32 0.0, %v4525_v1  ;;  %3655 = vrcp.f32 %v2106_v63  ;;  %v2402_v14 = vsel %vm2370_vm4, %v2354_v50, %v2386_v57 }
 0x951   : > { %v2359_v19 = vsub.f32 1.0, %v2343_v8  ;;  %v2388_v42 = vsub.f32 0.0, %v2356_v61  ;;  %v2389_v56 = vsub.f32 0.0, %v2357_v26  ;;  %v4614_v30 = vand.u32 2147483647, %v4598_v28 }
 0x952   : > { %v4603_v25 = vpop.eup %3651  ;;  %v2417_v41 = vadd.f32 1.0, %v2401_v0  ;;  %v2390_v58 = vsub.f32 0.0, %v2358_v17  ;;  %v2392_v15 = vsub.f32 0.0, %v2360_v53  ;;  %v4617_v38 = vmul.f32 0.70710677, %v4601_v13 }
 0x953   : > { %v4609_v40 = vpop.eup %3653  ;;  %v2391_v27 = vsub.f32 0.0, %v2359_v19  ;;  %v2137_v52 = vmul.f32 1.0614054, %v4603_v25  ;;  %v2092_v21 = vmul.f32 0.3275911, %v4614_v30  ;;  %v4622_v44 = vadd.f32 %v2028_v20, %v4394_v32 }
 0x954   : > { %v2419_v50 = vadd.f32 1.0, %v2403_v48  ;;  %v2418_v34 = vadd.f32 1.0, %v2402_v14  ;;  %v4625_v51 = vand.u32 2147483647, %v4617_v38  ;;  %v4628_v31 = vadd.f32 %v1977_v46, %v4400_v36 }
 0x955   : > { %v2404_v8 = vsel %vm2372_vm5, %v2356_v61, %v2388_v42  ;;  %v2405_v22 = vsel %vm2373_vm6, %v2357_v26, %v2389_v56  ;;  %v2139_v6 = vmul.f32 1.0614054, %v4609_v40  ;;  %v2108_v47 = vadd.f32 1.0, %v2092_v21  ;;  %v2030_v26 = vpop.f32.mrf.mxu0 }
 0x956   : > { %v2406_v32 = vsel %vm2374_vm7, %v2358_v17, %v2390_v58  ;;  %v2408_v57 = vsel %vm2376_vm9, %v2360_v53, %v2392_v15  ;;  %v2093_v63 = vmul.f32 0.3275911, %v4625_v51  ;;  %v4641_v36 = vmul.f32 0.70710677, %v4622_v44 }
 0x957   : > { %v2407_v60 = vsel %vm2375_vm8, %v2359_v19, %v2391_v27  ;;  %v2153_v61 = vadd.f32 -1.4531521, %v2137_v52  ;;  %3657 = vrcp.f32 %v2108_v47  ;;  %v4646_v62 = vmul.f32 0.70710677, %v4628_v31 }
 0x958   : > { %v2420_v0 = vadd.f32 1.0, %v2404_v8  ;;  %v2421_v5 = vadd.f32 1.0, %v2405_v22  ;;  %v2109_v17 = vadd.f32 1.0, %v2093_v63  ;;  %v4649_v16 = vand.u32 2147483647, %v4641_v36 }
 0x959   : > { %v2433_v53 = vmul.f32 %v2417_v41, %v4552_v39  ;;  %v2422_v48 = vadd.f32 1.0, %v2406_v32  ;;  %v2424_v20 = vadd.f32 1.0, %v2408_v57  ;;  %v4653_v14 = vand.u32 2147483647, %v4646_v62 }
 0x95a   : > { %v2423_v3 = vadd.f32 1.0, %v2407_v60  ;;  %v2155_v19 = vadd.f32 -1.4531521, %v2139_v6  ;;  %3659 = vrcp.f32 %v2109_v17  ;;  %v4656_v42 = vadd.f32 %v2030_v26, %v4402_v37 }
 0x95b   : > { %v2169_v56 = vmul.f32 %v4603_v25, %v2153_v61  ;;  %v2282_v46 = vsub.f32 0.0, %v4573_v54  ;;  %v2095_v58 = vmul.f32 0.3275911, %v4649_v16  ;;  %v2094_v15 = vmul.f32 0.3275911, %v4653_v14 }
 0x95c   : > { %v2435_v39 = vmul.f32 %v2419_v50, %v4555_v33  ;;  %v2434_v41 = vmul.f32 %v2418_v34, %v4566_v11  ;;  %v2436_v27 = vmul.f32 %v2420_v0, %v4569_v23  ;;  %v2437_v52 = vmul.f32 %v2421_v5, %v4576_v10 }
 0x95d   : > { %v4666_v21 = vpop.eup %3655  ;;  %v2438_v37 = vmul.f32 %v2422_v48, %v4587_v12  ;;  %v2440_v8 = vmul.f32 %v2424_v20, %v4593_v24  ;;  %v2111_v22 = vadd.f32 1.0, %v2095_v58  ;;  %v2110_v6 = vadd.f32 1.0, %v2094_v15 }
 0x95e   : > { %v2439_v47 = vmul.f32 %v2423_v3, %v4584_v55  ;;  %v2283_v32 = vsub.f32 0.0, %v4528_v45  ;;  %v2138_v33 = vmul.f32 1.0614054, %v4666_v21  ;;  %v4674_v11 = vmul.f32 0.70710677, %v4656_v42 }
 0x95f   : > { %v2185_v23 = vadd.f32 1.4214138, %v2169_v56  ;;  %v2171_v10 = vmul.f32 %v4609_v40, %v2155_v19  ;;  %v2298_v50 = vmul.f32 %v2282_v46, %v4573_v54  ;;  %3661 = vrcp.f32 %v2111_v22 }
 0x960   : > { %v2154_v12 = vadd.f32 -1.4531521, %v2138_v33  ;;  %v2285_v24 = vsub.f32 0.0, %v4625_v51  ;;  %3663 = vrcp.f32 %v2110_v6  ;;  %v4680_v34 = vand.u32 2147483647, %v4674_v11 }
 0x961   : > { %v2449_v55 = vpack.c.bf16 %v2437_v52, %v2433_v53  ;;  %v2297_v57 = vmul.f32 %v2281_v9, %v4525_v1  ;;  %v2450_v63 = vpack.c.bf16 %v2438_v37, %v2434_v41  ;;  %v2452_v60 = vpack.c.bf16 %v2440_v8, %v2436_v27 }
 0x962   : > { %v2451_v61 = vpack.c.bf16 %v2439_v47, %v2435_v39  ;;  %v2170_v26 = vmul.f32 %v4666_v21, %v2154_v12  ;;  %v2284_v54 = vsub.f32 0.0, %v4614_v30  ;;  %v2096_v0 = vmul.f32 0.3275911, %v4680_v34 }
 0x963   : > { %v2201_v5 = vmul.f32 %v4603_v25, %v2185_v23  ;;  %v2187_v17 = vadd.f32 1.4214138, %v2171_v10  ;;  %v2299_v48 = vmul.f32 %v2283_v32, %v4528_v45  ;;  %2752 = vmatprep.mubr.bf16.mxu1 %v2450_v63  ;;  %2801 = vmatprep.mubr.bf16.mxu0 %v2452_v60  ;;  %v2323_v1 = vmul.f32 1.442695, %v2298_v50 }
 0x964   : > { %v4690_v53 = vpop.eup %3657  ;;  %v2186_v20 = vadd.f32 1.4214138, %v2170_v26  ;;  %v2301_v9 = vmul.f32 %v2285_v24, %v4625_v51  ;;  %v2112_v3 = vadd.f32 1.0, %v2096_v0  ;;  %2753 = vmatmul.mubr.bf16.vlgmr.msra.gmra.mxu1 %v2449_v55  ;;  %2802 = vmatmul.mubr.bf16.vlgmr.msra.gmra.mxu0 %v2451_v61  ;;  %v2321_v19 = vmul.f32 1.442695, %v2297_v57 }
 0x965   : > { %v2140_v56 = vmul.f32 1.0614054, %v4690_v53  ;;  %v2287_v46 = vsub.f32 0.0, %v4649_v16  ;;  %v2286_v58 = vsub.f32 0.0, %v4653_v14  ;;  %v2300_v15 = vmul.f32 %v2284_v54, %v4614_v30 }
 0x966   : > { %v2202_v45 = vmul.f32 %v4666_v21, %v2186_v20  ;;  %3665 = vrcp.f32 %v2112_v3  ;;  %v2217_v41 = vadd.f32 -0.28449672, %v2201_v5  ;;  %v2203_v51 = vmul.f32 %v4609_v40, %v2187_v17 }
 0x967   : > { %v4698_v39 = vpop.eup %3659  ;;  %v2325_v27 = vmul.f32 1.442695, %v2299_v48  ;;  %v2156_v52 = vadd.f32 -1.4531521, %v2140_v56  ;;  %3667 = vpow2.f32 %v2323_v1  ;;  %v2329_v22 = vmul.f32 1.442695, %v2301_v9 }
 0x968   : > { %v2218_v37 = vadd.f32 -0.28449672, %v2202_v45  ;;  %v2141_v8 = vmul.f32 1.0614054, %v4698_v39  ;;  %3669 = vpow2.f32 %v2321_v19  ;;  %v2303_v47 = vmul.f32 %v2287_v46, %v4649_v16 }
 0x969   : > { %v2172_v6 = vmul.f32 %v4690_v53, %v2156_v52  ;;  %v2302_v30 = vmul.f32 %v2286_v58, %v4653_v14  ;;  %v2327_v33 = vmul.f32 1.442695, %v2300_v15  ;;  %v2233_v10 = vmul.f32 %v4603_v25, %v2217_v41 }
 0x96a   : > { %v2234_v32 = vmul.f32 %v4666_v21, %v2218_v37  ;;  %v2157_v23 = vadd.f32 -1.4531521, %v2141_v8  ;;  %3671 = vpow2.f32 %v2325_v27  ;;  %v2288_v12 = vsub.f32 0.0, %v4680_v34 }
 0x96b   : > { %v2188_v50 = vadd.f32 1.4214138, %v2172_v6  ;;  %v2219_v55 = vadd.f32 -0.28449672, %v2203_v51  ;;  %3673 = vpow2.f32 %v2329_v22  ;;  %v2333_v60 = vmul.f32 1.442695, %v2303_v47 }
 0x96c   : > { %v4708_v24 = vpop.eup %3661  ;;  %v2173_v57 = vmul.f32 %v4698_v39, %v2157_v23  ;;  %v2331_v61 = vmul.f32 1.442695, %v2302_v30  ;;  %v2250_v26 = vadd.f32 0.2548296, %v2234_v32  ;;  %3675 = vpow2.f32 %v2327_v33 }
 0x96d   : > { %v4711_v63 = vpop.eup %3663  ;;  %v2204_v16 = vmul.f32 %v4690_v53, %v2188_v50  ;;  %v2143_v14 = vmul.f32 1.0614054, %v4708_v24  ;;  %v2249_v5 = vadd.f32 0.2548296, %v2233_v10  ;;  %v2304_v20 = vmul.f32 %v2288_v12, %v4680_v34 }
 0x96e   : > { %v2189_v54 = vadd.f32 1.4214138, %v2173_v57  ;;  %v2142_v0 = vmul.f32 1.0614054, %v4711_v63  ;;  %v2235_v3 = vmul.f32 %v4609_v40, %v2219_v55  ;;  %3677 = vpow2.f32 %v2333_v60 }
 0x96f   : > { %v2220_v17 = vadd.f32 -0.28449672, %v2204_v16  ;;  %v2159_v48 = vadd.f32 -1.4531521, %v2143_v14  ;;  %v2266_v46 = vmul.f32 %v4666_v21, %v2250_v26  ;;  %3679 = vpow2.f32 %v2331_v61 }
 0x970   : > { %v2205_v1 = vmul.f32 %v4698_v39, %v2189_v54  ;;  %v2158_v9 = vadd.f32 -1.4531521, %v2142_v0  ;;  %v2265_v34 = vmul.f32 %v4603_v25, %v2249_v5  ;;  %v2335_v51 = vmul.f32 1.442695, %v2304_v20 }
 0x971   : > { %v2236_v19 = vmul.f32 %v4690_v53, %v2220_v17  ;;  %v2175_v56 = vmul.f32 %v4708_v24, %v2159_v48  ;;  %v2251_v6 = vadd.f32 0.2548296, %v2235_v3  ;;  %vm2381_vm10 = vcmp.ge.f32.partialorder %v4617_v38, 0.0 }
 0x972   : > { %v2221_v58 = vadd.f32 -0.28449672, %v2205_v1  ;;  %v2174_v45 = vmul.f32 %v4711_v63, %v2158_v9  ;;  %3681 = vpow2.f32 %v2335_v51  ;;  %vm2378_vm11 = vcmp.ge.f32.partialorder %v4561_v18, 0.0 }
 0x973   : > { %v4723_v15 = vpop.eup %3665  ;;  %v2191_v41 = vadd.f32 1.4214138, %v2175_v56  ;;  %v2252_v27 = vadd.f32 0.2548296, %v2236_v19  ;;  %v2267_v60 = vmul.f32 %v4609_v40, %v2251_v6  ;;  %vm2377_vm12 = vcmp.ge.f32.partialorder %v4509_v59, 0.0 }
 0x974   : > { %v2237_v52 = vmul.f32 %v4698_v39, %v2221_v58  ;;  %v2190_v37 = vadd.f32 1.4214138, %v2174_v45  ;;  %v2144_v8 = vmul.f32 1.0614054, %v4723_v15  ;;  %v3668_v22 = vpop.eup %3667  ;;  %vm2382_vm13 = vcmp.ge.f32.partialorder %v4646_v62, 0.0 }
 0x975   : > { %v2207_v21 = vmul.f32 %v4708_v24, %v2191_v41  ;;  %v3670_v47 = vpop.eup %3669  ;;  %v2346_v30 = vmul.f32 %v3668_v22, %v2266_v46  ;;  %v2268_v12 = vmul.f32 %v4690_v53, %v2252_v27  ;;  %vm2383_vm14 = vcmp.ge.f32.partialorder %v4641_v36, 0.0 }
 0x976   : > { %v2253_v32 = vadd.f32 0.2548296, %v2237_v52  ;;  %v2206_v33 = vmul.f32 %v4711_v63, %v2190_v37  ;;  %v2160_v23 = vadd.f32 -1.4531521, %v2144_v8  ;;  %v2345_v10 = vmul.f32 %v3670_v47, %v2265_v34 }
 0x977   : > { %v2223_v25 = vadd.f32 -0.28449672, %v2207_v21  ;;  %v3672_v50 = vpop.eup %3671  ;;  %v2362_v26 = vsub.f32 1.0, %v2346_v30  ;;  %v2041_v47 = vmul.f32 0.5, %v4490_v29  ;;  %vm2380_vm15 = vcmp.ge.f32.partialorder %v4598_v28, 0.0 }
 0x978   : > { %v2269_v55 = vmul.f32 %v4698_v39, %v2253_v32  ;;  %v2222_v57 = vadd.f32 -0.28449672, %v2206_v33  ;;  %v2176_v16 = vmul.f32 %v4723_v15, %v2160_v23  ;;  %v3674_v14 = vpop.eup %3673  ;;  %v2361_v48 = vsub.f32 1.0, %v2345_v10 }
 0x979   : > { %v2239_v61 = vmul.f32 %v4708_v24, %v2223_v25  ;;  %v3676_v17 = vpop.eup %3675  ;;  %v2347_v3 = vmul.f32 %v3672_v50, %v2267_v60  ;;  %v2394_v40 = vsub.f32 0.0, %v2362_v26  ;;  %v2042_v32 = vmul.f32 0.5, %v4546_v2 }
 0x97a   : > { %v2349_v54 = vmul.f32 %v3674_v14, %v2269_v55  ;;  %v2238_v0 = vmul.f32 %v4711_v63, %v2222_v57  ;;  %v2192_v5 = vadd.f32 1.4214138, %v2176_v16  ;;  %v2348_v1 = vmul.f32 %v3676_v17, %v2268_v12 }
 0x97b   : > { %v2255_v20 = vadd.f32 0.2548296, %v2239_v61  ;;  %v3678_v56 = vpop.eup %3677  ;;  %v2393_v41 = vsub.f32 0.0, %v2361_v48  ;;  %v2363_v8 = vsub.f32 1.0, %v2347_v3  ;;  %v2410_v6 = vsel %vm2378_vm11, %v2362_v26, %v2394_v40 }
 0x97c   : > { %v2365_v53 = vsub.f32 1.0, %v2349_v54  ;;  %v2254_v9 = vadd.f32 0.2548296, %v2238_v0  ;;  %v2208_v39 = vmul.f32 %v4723_v15, %v2192_v5  ;;  %v3680_v34 = vpop.eup %3679  ;;  %v2364_v27 = vsub.f32 1.0, %v2348_v1 }
 0x97d   : > { %v2271_v19 = vmul.f32 %v4708_v24, %v2255_v20  ;;  %v2409_v30 = vsel %vm2377_vm12, %v2361_v48, %v2393_v41  ;;  %v2395_v18 = vsub.f32 0.0, %v2363_v8  ;;  %v2426_v12 = vadd.f32 1.0, %v2410_v6 }
 0x97e   : > { %v2397_v46 = vsub.f32 0.0, %v2365_v53  ;;  %v2270_v58 = vmul.f32 %v4711_v63, %v2254_v9  ;;  %v2224_v45 = vadd.f32 -0.28449672, %v2208_v39  ;;  %v2396_v23 = vsub.f32 0.0, %v2364_v27 }
 0x97f   : > { %v2351_v51 = vmul.f32 %v3678_v56, %v2271_v19  ;;  %v3682_v38 = vpop.eup %3681  ;;  %v2045_v55 = vmul.f32 0.5, %v4601_v13  ;;  %v2425_v59 = vadd.f32 1.0, %v2409_v30  ;;  %v2046_v16 = vmul.f32 0.5, %v4628_v31 }
 0x980   : > { %v2350_v52 = vmul.f32 %v3680_v34, %v2270_v58  ;;  %v2240_v37 = vmul.f32 %v4723_v15, %v2224_v45  ;;  %v2413_v22 = vsel %vm2381_vm10, %v2365_v53, %v2397_v46  ;;  %vm2379_vm0 = vcmp.ge.f32.partialorder %v4515_v4, 0.0 }
 0x981   : > { %v2367_v24 = vsub.f32 1.0, %v2351_v51  ;;  %v2429_v10 = vadd.f32 1.0, %v2413_v22  ;;  %v2411_v26 = vsel %vm2379_vm0, %v2363_v8, %v2395_v18  ;;  %v2442_v13 = vmul.f32 %v2426_v12, %v2042_v32 }
 0x982   : > { %v2366_v21 = vsub.f32 1.0, %v2350_v52  ;;  %v2256_v63 = vadd.f32 0.2548296, %v2240_v37  ;;  %v2441_v62 = vmul.f32 %v2425_v59, %v2041_v47  ;;  %vm2384_vm1 = vcmp.ge.f32.partialorder %v4674_v11, 0.0 }
 0x983   : > { %v2399_v33 = vsub.f32 0.0, %v2367_v24  ;;  %v2445_v60 = vmul.f32 %v2429_v10, %v2045_v55  ;;  %v2427_v28 = vadd.f32 1.0, %v2411_v26  ;;  %v2047_v48 = vmul.f32 0.5, %v4622_v44 }
 0x984   : > { %v2398_v25 = vsub.f32 0.0, %v2366_v21  ;;  %v2272_v50 = vmul.f32 %v4723_v15, %v2256_v63  ;;  %v2412_v15 = vsel %vm2380_vm15, %v2364_v27, %v2396_v23  ;;  %v2044_v4 = vmul.f32 0.5, %v4579_v7  ;;  %v3172_v7 = vld [vmem:[%s719_s16] ss:$0 sm:$0xff] }
 0x985   : > { %v2415_v2 = vsel %vm2383_vm14, %v2367_v24, %v2399_v33  ;;  %v2428_v36 = vadd.f32 1.0, %v2412_v15  ;;  %v2453_v20 = vpack.c.bf16 %v2445_v60, %v2441_v62  ;;  %v2048_v1 = vmul.f32 0.5, %v4656_v42 }
 0x986   : > { %v2414_v29 = vsel %vm2382_vm13, %v2366_v21, %v2398_v25  ;;  %v2352_v57 = vmul.f32 %v3682_v38, %v2272_v50  ;;  %v2431_v0 = vadd.f32 1.0, %v2415_v2  ;;  %v2043_v9 = vmul.f32 0.5, %v4497_v35 }
 0x987   : > { %v2430_v14 = vadd.f32 1.0, %v2414_v29  ;;  %v2444_v3 = vmul.f32 %v2428_v36, %v2044_v4 }
 0x988   : > { %v2368_v61 = vsub.f32 1.0, %v2352_v57  ;;  %v2447_v39 = vmul.f32 %v2431_v0, %v2047_v48  ;;  %v2443_v11 = vmul.f32 %v2427_v28, %v2043_v9  ;;  %v4857_v57 = vld [vmem:[#allocation17_spill] sm:$0xff] }
 0x989   : > { %v2446_v54 = vmul.f32 %v2430_v14, %v2046_v16 }
 0x98a   : > { %v2400_v5 = vsub.f32 0.0, %v2368_v61  ;;  %v2455_v40 = vpack.c.bf16 %v2447_v39, %v2443_v11 }
 0x98b   : > { %v2454_v17 = vpack.c.bf16 %v2446_v54, %v2442_v13 }
 0x98c   : > { %v2416_v31 = vsel %vm2384_vm1, %v2368_v61, %v2400_v5 }
 0x98d   : > { %v2432_v53 = vadd.f32 1.0, %v2416_v31  ;;  %2760 = vmatprep.mubr.bf16.mxu1 %v2454_v17 }
 0x98e   : > { %2761 = vmatmul.mubr.bf16.gmra.mxu1 %v2453_v20 }
 0x98f   : > { %v2448_v19 = vmul.f32 %v2432_v53, %v2048_v1 }
 0x991   : > { %v2456_v56 = vpack.c.bf16 %v2448_v19, %v2444_v3 }
 0x993   : > { %2809 = vmatprep.mubr.bf16.mxu0 %v2456_v56  ;;  %v3205_v56 = vld [vmem:[%s722_s12] ss:$0 sm:$0xff]  ;;  %s2898_s12 = sshll.u32 %s3823_s3, 4  ;;  %s2899_s12 = int_to_ptr.vmem [resolvable:$true] %s2898_s12 }
 0x994   : > { %2810 = vmatmul.mubr.bf16.gmra.mxu0 %v2455_v40  ;;  %p3754_p12 = scmp.lt.s32.totalorder %s2899_s12, %s2899_s12 }
 0xa24   : > { %v3268_v44 = vpop.f32.mrf.mxu1  ;;  %v3296_v46 = vpop.f32.mrf.mxu0 }
 0xa26   : > { %v3269_v42 = vpop.f32.mrf.mxu1  ;;  %v3297_v58 = vpop.f32.mrf.mxu0 }
 0xa27   : > { %v3270_v45 = vadd.f32 %v3269_v42, %v3268_v44  ;;  %v3298_v51 = vadd.f32 %v3297_v58, %v3296_v46  ;;  %v3206_v44 = vld [vmem:[%s725_s18] ss:$0 sm:$0xff]  ;;  %s3747_s18 = scalar_lea.vmem %s2899_s12, 512 }
 0xa28   : > { %v3271_v35 = vpop.f32.mrf.mxu1  ;;  %v3299_v34 = vpop.f32.mrf.mxu0  ;;  %p3748_p4 = scmp.ne.s32.totalorder %s2899_s12, %s3747_s18  ;;  %p3755_p0 = scmp.lt.s32.totalorder %s3747_s18, %s3747_s18 }
 0xa29   : > { %v2755_v41 = vadd.f32 %v3270_v45, %v3172_v7 }
 0xa2a   : > { %v3272_v27 = vpop.f32.mrf.mxu1  ;;  %v3300_v52 = vpop.f32.mrf.mxu0  ;;  %p3749_p6 = pnand %p3748_p4, %p3408_p1  ;;  %p3756_p13 = por %p3755_p0, %p3754_p12 }
 0xa2b   : > { %v2804_v37 = vadd.f32 %v3298_v51, %v2755_v41  ;;  %v3273_v8 = vadd.f32 %v3272_v27, %v3271_v35  ;;  %v3301_v24 = vadd.f32 %v3300_v52, %v3299_v34 }
 0xa2c   : > { %p3750_p10 = pneg %p3749_p6 }
 0xa2d   : > { %v2758_v22 = vadd.f32 %v3273_v8, %v3172_v7  ;;  %v2818_v6 = vadd.f32 %v2804_v37, %v4341_v43 }
 0xa2e   : > { %p3757_p9 = pnand %p3756_p13, %p3750_p10 }
 0xa2f   : > { %v2807_v21 = vadd.f32 %v3301_v24, %v2758_v22  ;;  %2824 = vadd.xlane.f32.xlu1 %v2818_v6 }
 0xa31   : > { %v2819_v63 = vadd.f32 %v2807_v21, %v4343_v49  ;;  %v4858_v49 = vld [vmem:[#allocation16_spill] sm:$0xff] }
 0xa33   : > { %2826 = vadd.xlane.f32.xlu0 %v2819_v63 }
 0xa4e   : > { %v3274_v47 = vpop.f32.mrf.mxu1 }
 0xa50   : > { %v3275_v30 = vpop.f32.mrf.mxu1 }
 0xa51   : > { %v3276_v32 = vadd.f32 %v3275_v30, %v3274_v47 }
 0xa52   : > { %v3277_v33 = vpop.f32.mrf.mxu1 }
 0xa53   : > { %v2763_v10 = vadd.f32 %v3276_v32, %v3172_v7 }
 0xa54   : > { %v3302_v38 = vpop.f32.mrf.mxu0  ;;  %v3278_v23 = vpop.f32.mrf.mxu1 }
 0xa55   : > { %v3279_v25 = vadd.f32 %v3278_v23, %v3277_v33 }
 0xa56   : > { %v3303_v50 = vpop.f32.mrf.mxu0 }
 0xa57   : > { %v3304_v18 = vadd.f32 %v3303_v50, %v3302_v38  ;;  %v2766_v59 = vadd.f32 %v3279_v25, %v3172_v7 }
 0xa58   : > { %v3305_v12 = vpop.f32.mrf.mxu0 }
 0xa59   : > { %v2812_v55 = vadd.f32 %v3304_v18, %v2763_v10 }
 0xa5a   : > { %v3306_v29 = vpop.f32.mrf.mxu0 }
 0xa5b   : > { %v3307_v43 = vadd.f32 %v3306_v29, %v3305_v12  ;;  %v2820_v2 = vadd.f32 %v2812_v55, %v4857_v57 }
 0xa5d   : > { %v2815_v16 = vadd.f32 %v3307_v43, %v2766_v59  ;;  %2828 = vadd.xlane.f32.xlu1 %v2820_v2 }
 0xa5f   : > { %v2821_v14 = vadd.f32 %v2815_v16, %v4858_v49 }
 0xa61   : > { %2830 = vadd.xlane.f32.xlu0 %v2821_v14 }
 0xab8   : > { %v2825_v15 = vpop.xlane.xlu1 %2824 }
 0xab9   : > { %v2832_v60 = vmul.f32 0.0078125, %v2825_v15 }
 0xabb   : > { %v2836_v61 = vsub.f32 %v2818_v6, %v2832_v60 }
 0xabc   : > { %v2827_v26 = vpop.xlane.xlu0 %2826 }
 0xabd   : > { %v2833_v13 = vmul.f32 0.0078125, %v2827_v26  ;;  %v2840_v54 = vmul.f32 %v2836_v61, %v2836_v61 }
 0xabf   : > { %v2837_v62 = vsub.f32 %v2819_v63, %v2833_v13  ;;  %2844 = vadd.xlane.f32.xlu1 %v2840_v54 }
 0xac1   : > { %v2841_v0 = vmul.f32 %v2837_v62, %v2837_v62 }
 0xac3   : > { %2846 = vadd.xlane.f32.xlu0 %v2841_v0 }
 0xae6   : > { %v2829_v5 = vpop.xlane.xlu1 %2828 }
 0xae7   : > { %v2834_v36 = vmul.f32 0.0078125, %v2829_v5 }
 0xae9   : > { %v2838_v17 = vsub.f32 %v2820_v2, %v2834_v36 }
 0xaea   : > { %v2831_v28 = vpop.xlane.xlu0 %2830 }
 0xaeb   : > { %v2835_v48 = vmul.f32 0.0078125, %v2831_v28  ;;  %v2842_v31 = vmul.f32 %v2838_v17, %v2838_v17 }
 0xaed   : > { %v2839_v20 = vsub.f32 %v2821_v14, %v2835_v48  ;;  %2848 = vadd.xlane.f32.xlu1 %v2842_v31 }
 0xaef   : > { %v2843_v4 = vmul.f32 %v2839_v20, %v2839_v20 }
 0xaf1   : > { %2850 = vadd.xlane.f32.xlu0 %v2843_v4 }
 0xb48   : > { %v2845_v1 = vpop.xlane.xlu1 %2844 }
 0xb49   : > { %v2852_v53 = vmul.f32 0.0078125, %v2845_v1 }
 0xb4b   : > { %v2856_v9 = vadd.f32 1e-12, %v2852_v53 }
 0xb4c   : > { %v2847_v39 = vpop.xlane.xlu0 %2846 }
 0xb4d   : > { %3683 = vrsqrt.f32 %v2856_v9  ;;  %v2853_v3 = vmul.f32 0.0078125, %v2847_v39 }
 0xb4f   : > { %v2857_v19 = vadd.f32 1e-12, %v2853_v3 }
 0xb51   : > { %3685 = vrsqrt.f32 %v2857_v19 }
 0xb5a   : > { %v3684_v11 = vpop.eup %3683 }
 0xb5b   : > { %v2864_v40 = vmul.f32 %v3684_v11, %v2836_v61 }
 0xb5d   : > { %v2874_v46 = vmul.f32 %v3205_v56, %v2864_v40 }
 0xb5e   : > { %v3686_v7 = vpop.eup %3685 }
 0xb5f   : > { %v2865_v42 = vmul.f32 %v3686_v7, %v2837_v62  ;;  %v2884_v58 = vadd.f32 %v3206_v44, %v2874_v46 }
 0xb61   : > { %v2875_v45 = vmul.f32 %v3205_v56, %v2865_v42  ;;  %2888 = vst [vmem:[#allocation7] sm:$0xff] %v2884_v58 }
 0xb63   : > { %v2885_v35 = vadd.f32 %v3206_v44, %v2875_v45 }
 0xb65   : > { %2889 = vst [vmem:[#allocation7 + $0x8] sm:$0xff] %v2885_v35 }
 0xb76   : > { %v2849_v34 = vpop.xlane.xlu1 %2848 }
 0xb77   : > { %v2854_v41 = vmul.f32 0.0078125, %v2849_v34 }
 0xb79   : > { %v2858_v51 = vadd.f32 1e-12, %v2854_v41 }
 0xb7a   : > { %v2851_v27 = vpop.xlane.xlu0 %2850 }
 0xb7b   : > { %3687 = vrsqrt.f32 %v2858_v51  ;;  %v2855_v52 = vmul.f32 0.0078125, %v2851_v27 }
 0xb7d   : > { %v2859_v37 = vadd.f32 1e-12, %v2855_v52 }
 0xb7f   : > { %3689 = vrsqrt.f32 %v2859_v37 }
 0xb88   : > { %v3688_v8 = vpop.eup %3687 }
 0xb89   : > { %v2866_v22 = vmul.f32 %v3688_v8, %v2838_v17 }
 0xb8b   : > { %v2876_v24 = vmul.f32 %v3205_v56, %v2866_v22 }
 0xb8c   : > { %v3690_v6 = vpop.eup %3689 }
 0xb8d   : > { %v2867_v21 = vmul.f32 %v3690_v6, %v2839_v20  ;;  %v2886_v63 = vadd.f32 %v3206_v44, %v2876_v24 }
 0xb8f   : > { %v2877_v47 = vmul.f32 %v3205_v56, %v2867_v21  ;;  %2890 = vst [vmem:[#allocation7 + $0x10] sm:$0xff] %v2886_v63 }
 0xb91   : > { %v2887_v30 = vadd.f32 %v3206_v44, %v2877_v47 }
 0xb93   : > { %2891 = vst [vmem:[#allocation7 + $0x18] sm:$0xff] %v2887_v30 }
 0xb94   : > { %3760 = shalt.err (!%p3757_p9)
}
 0xb95   : > { %s3824_s30 = smov 128   ;;  %s3825_s28 = smov 8  }
 0xb96   : > { %s4859_s1 = sld [smem:[#allocation24_spill]] }
 0xb9c   : > { %3397 = dma.vmem_to_hbm [thread:$0]  (%p3408_p1), %s2899_s12, 512, %s4859_s1, [#allocation4], %s3824_s30, %s3824_s30, %s3825_s28  }
 0xb9d   : > { %3796 = dma.done.wait (%p3408_p1), [#allocation4], 512  }
 0xb9e   : > { %3798 = vsyncadd (%p3408_p1), [#allocation4], 4294966784 }
 0xb9f PF: > { %s4860_s24 = sld [smem:[#allocation13_spill]] }
 0xba0   : > { %s4861_s21 = sld [smem:[#allocation11_spill]] }
 0xba1   : > { %s4862_s22 = sld [smem:[#allocation12_spill]] }
 0xba2   : > { %s4863_s23 = sld [smem:[#allocation14_spill]] }
 0xba5   : > { %p30_p2 = scmp.ge.s32.totalorder %s4860_s24, 4  }
 0xba7   :  { %32 = sbr.rel (!%p30_p2) target bundleno = 14 (0xe), region = 168 }
 0xbac   :  { %2914 = vsyncpa [#allocation3], 1 }
 0xbad   :  { %2916 = vsyncpa [#allocation3 + $0x1], 1 }
 0xbae   :  { %2917 = vsyncpa [#allocation6], 1 }
 0xbaf   :  { %2919 = vsyncpa [#allocation6 + $0x1], 1 }
 0xbb0   :  { %2920 = vsyncpa [#allocation4], 1 }
 0xbb1   :  { %2922 = vsyncpa [#allocation4 + $0x1], 1 }

</bundles_post_ra>
